<compile_context>
chip_gen: v7x
topology: tpu7x:2x2x1
jax: 0.10.0
libtpu: 0.0.40
codegen_flags: <defaults>
</compile_context>

<pallas_src>
import jax
import jax.numpy as jnp
from jax import lax
from jax.experimental import pallas as pl
from jax.experimental.pallas import tpu as pltpu

HIDDEN = 32            # args.hidden_size
NUM_LOCAL_STATS = 4    # NUM_LOCAL_STATS constant
MAX_NEIGHBORS = 4      # args.max_neighbors
N_CAND = MAX_NEIGHBORS + 1
STATS_DIM = NUM_LOCAL_STATS + 1
K_AUX = 2 * N_CAND + STATS_DIM     # [scores_pre(5) | mask_bias(5) | stats(5)]
NEG_BIG = -1e9
LRELU_SLOPE = 0.2


def _leaky_relu(x):
    return jnp.where(x > 0, x, LRELU_SLOPE * x)


def sparrl_kernel(cand_ref, aux_ref,
                  w1n_ref, w1s_ref, b1_ref,
                  w2_ref, b2_ref, w3_ref, b3_ref,
                  out_ref):
    # cand_ref: (N_CAND, tm, H) bf16, candidate-major; candidate 0 is the src.
    # aux_ref : (tm, K_AUX) f32 = [pre-act scores | mask bias | stats].
    aux = aux_ref[...]                                            # (tm, 15)
    scores_pre = aux[:, :N_CAND]                                  # (tm, 5)
    mask_bias = aux[:, N_CAND:2 * N_CAND]                         # (tm, 5)
    stats = aux[:, 2 * N_CAND:2 * N_CAND + STATS_DIM]             # (tm, 5)

    # GAT attention: leaky_relu(score) + mask bias, softmax over 5 candidates
    # kept lane-packed as a single (tm, 5) array (f32 throughout).
    scores = _leaky_relu(scores_pre) + mask_bias                  # (tm, 5)
    m = jnp.max(scores, axis=-1, keepdims=True)                   # (tm, 1)
    e = jnp.exp(scores - m)                                       # (tm, 5)
    denom = jnp.sum(e, axis=-1, keepdims=True)                    # (tm, 1)
    w = e * pl.reciprocal(denom, approx=False)                    # (tm, 5)

    # Attention-weighted sum of candidate embeddings (bf16 -> f32 on load).
    node = None
    for n in range(N_CAND):
        contrib = w[:, n:n + 1] * cand_ref[n].astype(jnp.float32)  # (tm, H)
        node = contrib if node is None else node + contrib

    # NodeEncoder MLP (fc_1 split over node-emb / stats halves; no concat).
    h1 = _leaky_relu(
        jnp.dot(node, w1n_ref[...], preferred_element_type=jnp.float32)
        + jnp.dot(stats, w1s_ref[...], preferred_element_type=jnp.float32)
        + b1_ref[...])
    h2 = _leaky_relu(
        jnp.dot(h1, w2_ref[...], preferred_element_type=jnp.float32)
        + b2_ref[...])

    # q head, emitted lane-dense: contract (1, H) with (tm, H) -> (1, tm).
    q_row = lax.dot_general(w3_ref[...], h2, (((1,), (1,)), ((), ())),
                            preferred_element_type=jnp.float32)
    out_ref[...] = q_row + b3_ref[...]                            # (1, tm)


def _pick_tm(M, tm_max=1024):
    """Rows per grid step: multiple of 128, clamped for small M, and capped so
    the (single) parallel grid axis has >=2 steps when M allows (v7x 2 TCs)."""
    cover = ((M + 127) // 128) * 128          # smallest 128-multiple >= M
    tm = min(tm_max, cover)
    if cover >= 256:
        half = max(128, ((M + 255) // 256) * 128)   # round_up(M/2, 128)
        tm = min(tm, half)
    return tm


def sparrl_forward(params, subgraph, global_stats, local_stats, mask, neighs,
                   childs, *, tm_max=1024):
    """Pallas forward for SparRLNet."""
    del childs  # unused in the PyTorch forward
    B, S = subgraph.shape
    H = HIDDEN
    M = B * S
    tm = _pick_tm(M, tm_max)
    M_pad = ((M + tm - 1) // tm) * tm

    # --- JAX glue: embedding gathers + wrapper-side attention projections ---
    emb = params["node_embs"].astype(jnp.float32)            # (V, H)
    a_w = params["a_w"].astype(jnp.float32)                  # (1, 2H)
    a_src = a_w[0, :H]                                       # (H,)
    a_nb = a_w[0, H:]                                        # (H,)
    a_b = params["a_b"].astype(jnp.float32).reshape(())      # scalar

    # proj[:, 0] = emb @ a_src ; proj[:, 1] = emb @ a_nb   (tiny, once per call)
    proj = emb @ jnp.stack([a_src, a_nb], axis=1)             # (V, 2)

    ids = jnp.concatenate(
        [subgraph.reshape(1, M),
         jnp.moveaxis(neighs, 2, 0).reshape(MAX_NEIGHBORS, M)], axis=0)  # (5, M)

    cand = emb[ids].astype(jnp.bfloat16)                       # (5, M, H) bf16

    s_src = proj[ids[0], 0]                                    # (M,)
    s_nb = proj[ids, 1]                                        # (5, M)
    scores_pre = (s_src[None, :] + s_nb + a_b).T               # (M, 5) f32

    mask_bias = jnp.concatenate(
        [jnp.zeros((M, 1), jnp.float32),                       # self-candidate
         mask.astype(jnp.float32).reshape(M, MAX_NEIGHBORS) * NEG_BIG],
        axis=-1)                                               # (M, 5)

    stats = jnp.concatenate(
        [local_stats, jnp.broadcast_to(global_stats, (B, S, 1))],
        axis=-1).reshape(M, STATS_DIM).astype(jnp.float32)     # (M, 5)

    aux = jnp.concatenate([scores_pre, mask_bias, stats], axis=-1)  # (M, 15)

    pad = M_pad - M
    if pad:
        cand = jnp.pad(cand, ((0, 0), (0, pad), (0, 0)))
        aux = jnp.pad(aux, ((0, pad), (0, 0)))

    # torch Linear stores weights as (out, in); transpose for x @ W layout.
    w1 = params["fc1_w"].astype(jnp.float32).T   # (H + STATS_DIM, H)
    w1n = w1[:H]                                 # (H, H)
    w1s = w1[H:]                                 # (STATS_DIM, H)
    b1 = params["fc1_b"].astype(jnp.float32).reshape(1, H)
    w2 = params["fc2_w"].astype(jnp.float32).T   # (H, H)
    b2 = params["fc2_b"].astype(jnp.float32).reshape(1, H)
    w3 = params["q_w"].astype(jnp.float32).reshape(1, H)   # (1, H) lane-dense
    b3 = params["q_b"].astype(jnp.float32).reshape(1, 1)

    def full(shape):
        return pl.BlockSpec(shape, lambda i, _s=shape: tuple(0 for _ in _s))

    q = pl.pallas_call(
        sparrl_kernel,
        out_shape=jax.ShapeDtypeStruct((1, M_pad), jnp.float32),
        grid_spec=pltpu.PrefetchScalarGridSpec(
            num_scalar_prefetch=0,
            grid=(M_pad // tm,),
            in_specs=[
                pl.BlockSpec((N_CAND, tm, H), lambda i: (0, i, 0)),  # cand bf16
                pl.BlockSpec((tm, K_AUX), lambda i: (i, 0)),         # aux f32
                full((H, H)), full((STATS_DIM, H)), full((1, H)),    # fc_1
                full((H, H)), full((1, H)),                          # fc_2
                full((1, H)), full((1, 1)),                          # q_fc_3
            ],
            out_specs=pl.BlockSpec((1, tm), lambda i: (0, i)),
        ),
        compiler_params=pltpu.CompilerParams(
            dimension_semantics=("parallel",),
            vmem_limit_bytes=32 * 1024 * 1024),
    )(cand, aux, w1n, w1s, b1, w2, b2, w3, b3)

    q = q.reshape(M_pad)[:M]
    return q if B == 1 else q.reshape(B, S)


def sparrl_reference(params, subgraph, global_stats, local_stats, mask, neighs,
                     childs):
    """Pure-JAX mirror of the PyTorch forward (for correctness check)."""
    del childs
    emb = params["node_embs"]
    src = emb[subgraph][:, :, None, :]                        # (B, S, 1, H)
    nbr = emb[neighs]                                         # (B, S, MAX_NB, H)
    neigh_embs = jnp.concatenate([src, nbr], axis=2)          # (B, S, N, H)
    src_rep = jnp.broadcast_to(src, neigh_embs.shape)
    embs = jnp.concatenate([src_rep, neigh_embs], axis=-1)    # (B, S, N, 2H)
    att = embs @ params["a_w"].T + params["a_b"]              # (B, S, N, 1)
    att = jnp.where(att > 0, att, LRELU_SLOPE * att)
    att = att.at[:, :, 1:].add(mask.astype(jnp.float32) * NEG_BIG)
    w = jax.nn.softmax(att, axis=2)
    node = jnp.squeeze(jnp.swapaxes(w, 3, 2) @ neigh_embs, axis=2)  # (B, S, H)
    stats = jnp.concatenate(
        [local_stats,
         jnp.broadcast_to(global_stats, local_stats.shape[:2] + (1,))], axis=-1)
    x = jnp.concatenate([node, stats], axis=-1)
    h1 = x @ params["fc1_w"].T + params["fc1_b"]
    h1 = jnp.where(h1 > 0, h1, LRELU_SLOPE * h1)
    h2 = h1 @ params["fc2_w"].T + params["fc2_b"]
    h2 = jnp.where(h2 > 0, h2, LRELU_SLOPE * h2)
    q = h2 @ params["q_w"].T + params["q_b"]
    B = subgraph.shape[0]
    return q.reshape(-1) if B == 1 else q.reshape(q.shape[0], q.shape[1])


if __name__ == "__main__":
    key = jax.random.PRNGKey(0)
    B, S = 2, 8
    num_nodes = 20
    keys = jax.random.split(key, 12)

    params = {
        "node_embs": jax.random.normal(keys[0], (num_nodes + 1, HIDDEN), jnp.float32) * 0.1,
        "a_w":   jax.random.normal(keys[1], (1, 2 * HIDDEN), jnp.float32) * 0.1,
        "a_b":   jax.random.normal(keys[2], (1,), jnp.float32) * 0.1,
        "fc1_w": jax.random.normal(keys[3], (HIDDEN, HIDDEN + STATS_DIM), jnp.float32) * 0.1,
        "fc1_b": jax.random.normal(keys[4], (HIDDEN,), jnp.float32) * 0.1,
        "fc2_w": jax.random.normal(keys[5], (HIDDEN, HIDDEN), jnp.float32) * 0.1,
        "fc2_b": jax.random.normal(keys[6], (HIDDEN,), jnp.float32) * 0.1,
        "q_w":   jax.random.normal(keys[7], (1, HIDDEN), jnp.float32) * 0.1,
        "q_b":   jax.random.normal(keys[8], (1,), jnp.float32) * 0.1,
    }

    subgraph = jax.random.randint(keys[9], (B, S), 0, num_nodes + 1)
    neighs = jax.random.randint(keys[10], (B, S, MAX_NEIGHBORS), 0, num_nodes + 1)
    mask = jax.random.bernoulli(keys[11], 0.3, (B, S, MAX_NEIGHBORS, 1)).astype(jnp.float32)
    global_stats = jax.random.normal(jax.random.PRNGKey(1), (B, 1, 1), jnp.float32)
    local_stats = jax.random.normal(jax.random.PRNGKey(2), (B, S, NUM_LOCAL_STATS), jnp.float32)
    childs = jnp.zeros((B, S), jnp.int32)  # present in the API, unused in forward

    out = sparrl_forward(params, subgraph, global_stats, local_stats, mask,
                         neighs, childs)
    out = jax.block_until_ready(out)

    ref = sparrl_reference(params, subgraph, global_stats, local_stats, mask,
                           neighs, childs)
    assert out.shape == (B, S), out.shape
    # Tolerance accounts for bf16 candidate embeddings (f32 accumulation).
    assert jnp.allclose(out, ref, atol=5e-3, rtol=5e-3), (out, ref)
    print("KERNEL_OK")
</pallas_src>

<mosaic_0001>
module attributes {stable_mosaic.version = 11 : i64} {
  func.func @sparrl_kernel(%arg0: i32, %arg1: memref<5x128x32xbf16, #tpu.memory_space<vmem>>, %arg2: memref<128x15xf32, #tpu.memory_space<vmem>>, %arg3: memref<32x32xf32, #tpu.memory_space<vmem>>, %arg4: memref<5x32xf32, #tpu.memory_space<vmem>>, %arg5: memref<1x32xf32, #tpu.memory_space<vmem>>, %arg6: memref<32x32xf32, #tpu.memory_space<vmem>>, %arg7: memref<1x32xf32, #tpu.memory_space<vmem>>, %arg8: memref<1x32xf32, #tpu.memory_space<vmem>>, %arg9: memref<1x1xf32, #tpu.memory_space<vmem>>, %arg10: memref<1x128xf32, #tpu.memory_space<vmem>>) attributes {dimension_semantics = [#tpu.dimension_semantics<parallel>], iteration_bounds = array<i64: 1>, scalar_prefetch = 0 : i64, scratch_operands = 0 : i64, tpu.core_type = #tpu.core_type<tc>, window_params = [{transform_indices = @transform_0, window_bounds = array<i64: 5, 128, 32>}, {transform_indices = @transform_1, window_bounds = array<i64: 128, 15>}, {pipeline_mode = #tpu.pipeline_mode<synchronous>, transform_indices = @transform_2, window_bounds = array<i64: 32, 32>}, {pipeline_mode = #tpu.pipeline_mode<synchronous>, transform_indices = @transform_3, window_bounds = array<i64: 5, 32>}, {pipeline_mode = #tpu.pipeline_mode<synchronous>, transform_indices = @transform_4, window_bounds = array<i64: 1, 32>}, {pipeline_mode = #tpu.pipeline_mode<synchronous>, transform_indices = @transform_5, window_bounds = array<i64: 32, 32>}, {pipeline_mode = #tpu.pipeline_mode<synchronous>, transform_indices = @transform_6, window_bounds = array<i64: 1, 32>}, {pipeline_mode = #tpu.pipeline_mode<synchronous>, transform_indices = @transform_7, window_bounds = array<i64: 1, 32>}, {pipeline_mode = #tpu.pipeline_mode<synchronous>, transform_indices = @transform_8, window_bounds = array<i64: 1, 1>}, {transform_indices = @transform_9, window_bounds = array<i64: 1, 128>}]} {
    %c0 = arith.constant 0 : index
    %c0_0 = arith.constant 0 : index
    %0 = vector.load %arg2[%c0, %c0_0] : memref<128x15xf32, #tpu.memory_space<vmem>>, vector<128x15xf32>
    %1 = vector.extract_strided_slice %0 {offsets = [0, 0], sizes = [128, 5], strides = [1, 1]} : vector<128x15xf32> to vector<128x5xf32>
    %2 = vector.extract_strided_slice %0 {offsets = [0, 5], sizes = [128, 5], strides = [1, 1]} : vector<128x15xf32> to vector<128x5xf32>
    %3 = vector.extract_strided_slice %0 {offsets = [0, 10], sizes = [128, 5], strides = [1, 1]} : vector<128x15xf32> to vector<128x5xf32>
    %cst = arith.constant 0.000000e+00 : f32
    %4 = vector.broadcast %cst : f32 to vector<128x5xf32>
    %5 = arith.cmpf ogt, %1, %4 : vector<128x5xf32>
    %cst_1 = arith.constant 2.000000e-01 : f32
    %6 = vector.broadcast %cst_1 : f32 to vector<128x5xf32>
    %7 = arith.mulf %6, %1 : vector<128x5xf32>
    %8 = arith.select %5, %1, %7 : vector<128x5xi1>, vector<128x5xf32>
    %9 = arith.addf %8, %2 : vector<128x5xf32>
    %cst_2 = arith.constant dense<0xFF800000> : vector<128xf32>
    %10 = vector.multi_reduction <maximumf>, %9, %cst_2 [1] : vector<128x5xf32> to vector<128xf32>
    %11 = vector.shape_cast %10 : vector<128xf32> to vector<128x1xf32>
    %12 = vector.broadcast %11 : vector<128x1xf32> to vector<128x5xf32>
    %13 = arith.subf %9, %12 : vector<128x5xf32>
    %14 = math.exp %13 : vector<128x5xf32>
    %cst_3 = arith.constant dense<0.000000e+00> : vector<128xf32>
    %15 = vector.multi_reduction <add>, %14, %cst_3 [1] : vector<128x5xf32> to vector<128xf32>
    %16 = vector.shape_cast %15 : vector<128xf32> to vector<128x1xf32>
    %17 = tpu.reciprocal %16 : vector<128x1xf32> -> vector<128x1xf32>
    %18 = vector.broadcast %17 : vector<128x1xf32> to vector<128x5xf32>
    %19 = arith.mulf %14, %18 : vector<128x5xf32>
    %20 = vector.extract_strided_slice %19 {offsets = [0, 0], sizes = [128, 1], strides = [1, 1]} : vector<128x5xf32> to vector<128x1xf32>
    %c0_4 = arith.constant 0 : index
    %c0_5 = arith.constant 0 : index
    %c0_6 = arith.constant 0 : index
    %21 = vector.load %arg1[%c0_4, %c0_5, %c0_6] : memref<5x128x32xbf16, #tpu.memory_space<vmem>>, vector<1x128x32xbf16>
    %22 = vector.shape_cast %21 : vector<1x128x32xbf16> to vector<128x32xbf16>
    %23 = arith.extf %22 : vector<128x32xbf16> to vector<128x32xf32>
    %24 = vector.broadcast %20 : vector<128x1xf32> to vector<128x32xf32>
    %25 = arith.mulf %24, %23 : vector<128x32xf32>
    %26 = vector.extract_strided_slice %19 {offsets = [0, 1], sizes = [128, 1], strides = [1, 1]} : vector<128x5xf32> to vector<128x1xf32>
    %c1 = arith.constant 1 : index
    %c0_7 = arith.constant 0 : index
    %c0_8 = arith.constant 0 : index
    %27 = vector.load %arg1[%c1, %c0_7, %c0_8] : memref<5x128x32xbf16, #tpu.memory_space<vmem>>, vector<1x128x32xbf16>
    %28 = vector.shape_cast %27 : vector<1x128x32xbf16> to vector<128x32xbf16>
    %29 = arith.extf %28 : vector<128x32xbf16> to vector<128x32xf32>
    %30 = vector.broadcast %26 : vector<128x1xf32> to vector<128x32xf32>
    %31 = arith.mulf %30, %29 : vector<128x32xf32>
    %32 = arith.addf %25, %31 : vector<128x32xf32>
    %33 = vector.extract_strided_slice %19 {offsets = [0, 2], sizes = [128, 1], strides = [1, 1]} : vector<128x5xf32> to vector<128x1xf32>
    %c2 = arith.constant 2 : index
    %c0_9 = arith.constant 0 : index
    %c0_10 = arith.constant 0 : index
    %34 = vector.load %arg1[%c2, %c0_9, %c0_10] : memref<5x128x32xbf16, #tpu.memory_space<vmem>>, vector<1x128x32xbf16>
    %35 = vector.shape_cast %34 : vector<1x128x32xbf16> to vector<128x32xbf16>
    %36 = arith.extf %35 : vector<128x32xbf16> to vector<128x32xf32>
    %37 = vector.broadcast %33 : vector<128x1xf32> to vector<128x32xf32>
    %38 = arith.mulf %37, %36 : vector<128x32xf32>
    %39 = arith.addf %32, %38 : vector<128x32xf32>
    %40 = vector.extract_strided_slice %19 {offsets = [0, 3], sizes = [128, 1], strides = [1, 1]} : vector<128x5xf32> to vector<128x1xf32>
    %c3 = arith.constant 3 : index
    %c0_11 = arith.constant 0 : index
    %c0_12 = arith.constant 0 : index
    %41 = vector.load %arg1[%c3, %c0_11, %c0_12] : memref<5x128x32xbf16, #tpu.memory_space<vmem>>, vector<1x128x32xbf16>
    %42 = vector.shape_cast %41 : vector<1x128x32xbf16> to vector<128x32xbf16>
    %43 = arith.extf %42 : vector<128x32xbf16> to vector<128x32xf32>
    %44 = vector.broadcast %40 : vector<128x1xf32> to vector<128x32xf32>
    %45 = arith.mulf %44, %43 : vector<128x32xf32>
    %46 = arith.addf %39, %45 : vector<128x32xf32>
    %47 = vector.extract_strided_slice %19 {offsets = [0, 4], sizes = [128, 1], strides = [1, 1]} : vector<128x5xf32> to vector<128x1xf32>
    %c4 = arith.constant 4 : index
    %c0_13 = arith.constant 0 : index
    %c0_14 = arith.constant 0 : index
    %48 = vector.load %arg1[%c4, %c0_13, %c0_14] : memref<5x128x32xbf16, #tpu.memory_space<vmem>>, vector<1x128x32xbf16>
    %49 = vector.shape_cast %48 : vector<1x128x32xbf16> to vector<128x32xbf16>
    %50 = arith.extf %49 : vector<128x32xbf16> to vector<128x32xf32>
    %51 = vector.broadcast %47 : vector<128x1xf32> to vector<128x32xf32>
    %52 = arith.mulf %51, %50 : vector<128x32xf32>
    %53 = arith.addf %46, %52 : vector<128x32xf32>
    %c0_15 = arith.constant 0 : index
    %c0_16 = arith.constant 0 : index
    %54 = vector.load %arg3[%c0_15, %c0_16] : memref<32x32xf32, #tpu.memory_space<vmem>>, vector<32x32xf32>
    %cst_17 = arith.constant dense<0.000000e+00> : vector<128x32xf32>
    %55 = tpu.matmul %53, %54, %cst_17 {dimension_numbers = #tpu.dot_dimension_numbers<[1], [0], [0], [1], [0, 0, 1, 1], [], []>} : vector<128x32xf32>, vector<32x32xf32>, vector<128x32xf32> -> vector<128x32xf32>
    %c0_18 = arith.constant 0 : index
    %c0_19 = arith.constant 0 : index
    %56 = vector.load %arg4[%c0_18, %c0_19] : memref<5x32xf32, #tpu.memory_space<vmem>>, vector<5x32xf32>
    %cst_20 = arith.constant dense<0.000000e+00> : vector<128x32xf32>
    %57 = tpu.matmul %3, %56, %cst_20 {dimension_numbers = #tpu.dot_dimension_numbers<[1], [0], [0], [1], [0, 0, 1, 1], [], []>} : vector<128x5xf32>, vector<5x32xf32>, vector<128x32xf32> -> vector<128x32xf32>
    %58 = arith.addf %55, %57 : vector<128x32xf32>
    %c0_21 = arith.constant 0 : index
    %c0_22 = arith.constant 0 : index
    %59 = vector.load %arg5[%c0_21, %c0_22] : memref<1x32xf32, #tpu.memory_space<vmem>>, vector<1x32xf32>
    %60 = vector.broadcast %59 : vector<1x32xf32> to vector<128x32xf32>
    %61 = arith.addf %58, %60 : vector<128x32xf32>
    %cst_23 = arith.constant 0.000000e+00 : f32
    %62 = vector.broadcast %cst_23 : f32 to vector<128x32xf32>
    %63 = arith.cmpf ogt, %61, %62 : vector<128x32xf32>
    %cst_24 = arith.constant 2.000000e-01 : f32
    %64 = vector.broadcast %cst_24 : f32 to vector<128x32xf32>
    %65 = arith.mulf %64, %61 : vector<128x32xf32>
    %66 = arith.select %63, %61, %65 : vector<128x32xi1>, vector<128x32xf32>
    %c0_25 = arith.constant 0 : index
    %c0_26 = arith.constant 0 : index
    %67 = vector.load %arg6[%c0_25, %c0_26] : memref<32x32xf32, #tpu.memory_space<vmem>>, vector<32x32xf32>
    %cst_27 = arith.constant dense<0.000000e+00> : vector<128x32xf32>
    %68 = tpu.matmul %66, %67, %cst_27 {dimension_numbers = #tpu.dot_dimension_numbers<[1], [0], [0], [1], [0, 0, 1, 1], [], []>} : vector<128x32xf32>, vector<32x32xf32>, vector<128x32xf32> -> vector<128x32xf32>
    %c0_28 = arith.constant 0 : index
    %c0_29 = arith.constant 0 : index
    %69 = vector.load %arg7[%c0_28, %c0_29] : memref<1x32xf32, #tpu.memory_space<vmem>>, vector<1x32xf32>
    %70 = vector.broadcast %69 : vector<1x32xf32> to vector<128x32xf32>
    %71 = arith.addf %68, %70 : vector<128x32xf32>
    %cst_30 = arith.constant 0.000000e+00 : f32
    %72 = vector.broadcast %cst_30 : f32 to vector<128x32xf32>
    %73 = arith.cmpf ogt, %71, %72 : vector<128x32xf32>
    %cst_31 = arith.constant 2.000000e-01 : f32
    %74 = vector.broadcast %cst_31 : f32 to vector<128x32xf32>
    %75 = arith.mulf %74, %71 : vector<128x32xf32>
    %76 = arith.select %73, %71, %75 : vector<128x32xi1>, vector<128x32xf32>
    %c0_32 = arith.constant 0 : index
    %c0_33 = arith.constant 0 : index
    %77 = vector.load %arg8[%c0_32, %c0_33] : memref<1x32xf32, #tpu.memory_space<vmem>>, vector<1x32xf32>
    %cst_34 = arith.constant dense<0.000000e+00> : vector<1x128xf32>
    %78 = tpu.matmul %77, %76, %cst_34 {dimension_numbers = #tpu.dot_dimension_numbers<[1], [1], [0], [0], [0, 0, 1, 0], [], []>} : vector<1x32xf32>, vector<128x32xf32>, vector<1x128xf32> -> vector<1x128xf32>
    %c0_35 = arith.constant 0 : index
    %c0_36 = arith.constant 0 : index
    %79 = vector.load %arg9[%c0_35, %c0_36] : memref<1x1xf32, #tpu.memory_space<vmem>>, vector<1x1xf32>
    %80 = vector.broadcast %79 : vector<1x1xf32> to vector<1x128xf32>
    %81 = arith.addf %78, %80 : vector<1x128xf32>
    %c0_37 = arith.constant 0 : index
    %c0_38 = arith.constant 0 : index
    %82 = vector.load %arg10[%c0_37, %c0_38] : memref<1x128xf32, #tpu.memory_space<vmem>>, vector<1x128xf32>
    tpu.vector_store %arg10[%c0_37, %c0_38], %81 {strides = array<i32>} : memref<1x128xf32, #tpu.memory_space<vmem>>, vector<1x128xf32>,
    return
  }
  func.func @transform_0(%arg0: i32) -> (i32, i32, i32) {
    %c0_i32 = arith.constant 0 : i32
    %c0_i32_0 = arith.constant 0 : i32
    %c0_i32_1 = arith.constant 0 : i32
    return %c0_i32, %arg0, %c0_i32_0 : i32, i32, i32
  }
  func.func @transform_1(%arg0: i32) -> (i32, i32) {
    %c0_i32 = arith.constant 0 : i32
    %c0_i32_0 = arith.constant 0 : i32
    return %arg0, %c0_i32 : i32, i32
  }
  func.func @transform_2(%arg0: i32) -> (i32, i32) {
    %c0_i32 = arith.constant 0 : i32
    %c0_i32_0 = arith.constant 0 : i32
    %c0_i32_1 = arith.constant 0 : i32
    return %c0_i32, %c0_i32_0 : i32, i32
  }
  func.func @transform_3(%arg0: i32) -> (i32, i32) {
    %c0_i32 = arith.constant 0 : i32
    %c0_i32_0 = arith.constant 0 : i32
    %c0_i32_1 = arith.constant 0 : i32
    return %c0_i32, %c0_i32_0 : i32, i32
  }
  func.func @transform_4(%arg0: i32) -> (i32, i32) {
    %c0_i32 = arith.constant 0 : i32
    %c0_i32_0 = arith.constant 0 : i32
    %c0_i32_1 = arith.constant 0 : i32
    return %c0_i32, %c0_i32_0 : i32, i32
  }
  func.func @transform_5(%arg0: i32) -> (i32, i32) {
    %c0_i32 = arith.constant 0 : i32
    %c0_i32_0 = arith.constant 0 : i32
    %c0_i32_1 = arith.constant 0 : i32
    return %c0_i32, %c0_i32_0 : i32, i32
  }
  func.func @transform_6(%arg0: i32) -> (i32, i32) {
    %c0_i32 = arith.constant 0 : i32
    %c0_i32_0 = arith.constant 0 : i32
    %c0_i32_1 = arith.constant 0 : i32
    return %c0_i32, %c0_i32_0 : i32, i32
  }
  func.func @transform_7(%arg0: i32) -> (i32, i32) {
    %c0_i32 = arith.constant 0 : i32
    %c0_i32_0 = arith.constant 0 : i32
    %c0_i32_1 = arith.constant 0 : i32
    return %c0_i32, %c0_i32_0 : i32, i32
  }
  func.func @transform_8(%arg0: i32) -> (i32, i32) {
    %c0_i32 = arith.constant 0 : i32
    %c0_i32_0 = arith.constant 0 : i32
    %c0_i32_1 = arith.constant 0 : i32
    return %c0_i32, %c0_i32_0 : i32, i32
  }
  func.func @transform_9(%arg0: i32) -> (i32, i32) {
    %c0_i32 = arith.constant 0 : i32
    %c0_i32_0 = arith.constant 0 : i32
    return %c0_i32, %arg0 : i32, i32
  }
}

</mosaic_0001>

<bundles_post_ra>
// kernel: tpu_custom_call.1
= control target key start
LH: loop header
LB: loop body
LE: loop exit
PB: predicated region body
PF: predicated region fallthrough
CT: control target
= control target key end

     0   :  { %s3447_s0 = inlined_call_operand.vmem [shape: bf16[5,128,32], index: 0, kind: input, shape index: {}]   ;;  %s3448_s1 = inlined_call_operand.vmem [shape: f32[128,15], index: 1, kind: input, shape index: {}]   ;;  %s3449_s2 = inlined_call_operand.vmem [shape: f32[32,32], index: 2, kind: input, shape index: {}]   ;;  %s3450_s3 = inlined_call_operand.vmem [shape: f32[5,32], index: 3, kind: input, shape index: {}]   ;;  %s3451_s4 = inlined_call_operand.vmem [shape: f32[1,32], index: 4, kind: input, shape index: {}]   ;;  %s3452_s5 = inlined_call_operand.vmem [shape: f32[32,32], index: 5, kind: input, shape index: {}]   ;;  %s3453_s6 = inlined_call_operand.vmem [shape: f32[1,32], index: 6, kind: input, shape index: {}]   ;;  %s3454_s7 = inlined_call_operand.vmem [shape: f32[1,32], index: 7, kind: input, shape index: {}]   ;;  %s3455_s8 = inlined_call_operand.<no memory space> [shape: f32[1,1], index: 8, kind: input, shape index: {}]   ;;  %s3456_s9 = inlined_call_operand.hbm [shape: f32[1,128], index: 9, kind: output, shape index: {}]  }
   0x1   :  { %v14_v0 = vstv %s3455_s8 }
   0x2   :  { %15 = vst [vmem:[#allocation2] sm:$0x1] %v14_v0 }
   0x3   :  { %v35_v1 = vld [vmem:[%s3448_s1] sm:$0xff]  ;;  %v37_v2 = vld [vmem:[%s3448_s1 + $0x10] sm:$0xff]  ;;  %s2644_s15 = smov 123   ;;  %v36_v3 = vld [vmem:[%s3448_s1 + $0x8] sm:$0xff] }
   0x4   :  { %115 = vrot.lane.b32.xlu0 %v35_v1, %s2644_s15  ;;  %119 = vrot.lane.b32.xlu1 %v37_v2, %s2644_s15  ;;  %v38_v4 = vld [vmem:[%s3448_s1 + $0x18] sm:$0xff]  ;;  %v2727_v5 = vld [vmem:[%s3448_s1 + $0x20] sm:$0xff] }
   0x5   :  { %v2732_v6 = vld [vmem:[%s3448_s1 + $0x28] sm:$0xff] }
   0x8   :  { %117 = vrot.lane.b32.xlu0 %v36_v3, %s2644_s15  ;;  %121 = vrot.lane.b32.xlu1 %v38_v4, %s2644_s15 }
   0x9   :  { %16 = vsyncpa [#allocation4], 0  ;;  %v2741_v7 = vld [vmem:[%s3448_s1 + $0x30] sm:$0xff]  ;;  %v2746_v8 = vld [vmem:[%s3448_s1 + $0x38] sm:$0xff]  ;;  %vm1069_vm0 = vcmask 1044480   ;;  %vm51_vm1 = vcmp.gt.f32.partialorder %v35_v1, 0.0 }
   0xa   :  { %v2755_v9 = vld [vmem:[%s3448_s1 + $0x40] sm:$0xff]  ;;  %v2760_v10 = vld [vmem:[%s3448_s1 + $0x48] sm:$0xff]  ;;  %v2769_v11 = vld [vmem:[%s3448_s1 + $0x50] sm:$0xff]  ;;  %v67_v18 = vmul.f32 0.2, %v35_v1  ;;  %vm53_vm2 = vcmp.gt.f32.partialorder %v37_v2, 0.0 }
   0xb   :  { %v2774_v12 = vld [vmem:[%s3448_s1 + $0x58] sm:$0xff]  ;;  %v2783_v13 = vld [vmem:[%s3448_s1 + $0x60] sm:$0xff]  ;;  %v2788_v14 = vld [vmem:[%s3448_s1 + $0x68] sm:$0xff]  ;;  %v69_v19 = vmul.f32 0.2, %v37_v2  ;;  %vm52_vm3 = vcmp.gt.f32.partialorder %v36_v3, 0.0 }
   0xc   :  { %123 = vrot.lane.b32.xlu0 %v2727_v5, %s2644_s15  ;;  %125 = vrot.lane.b32.xlu1 %v2732_v6, %s2644_s15  ;;  %v1004_v15 = vld [vmem:[%s3450_s3] sm:$0x1f]  ;;  %v2800_v16 = vld [vmem:[%s3448_s1 + $0x70] sm:$0xff]  ;;  %s2645_s3 = smov 118   ;;  %v83_v20 = vsel %vm51_vm1, %v35_v1, %v67_v18  ;;  %v68_v22 = vmul.f32 0.2, %v36_v3 }
   0xd   :  { %2287 = vmatprep.subr.msk.mxu0 %vm1069_vm0, %v1004_v15  ;;  %v2805_v17 = vld [vmem:[%s3448_s1 + $0x78] sm:$0xff]  ;;  %v85_v21 = vsel %vm53_vm2, %v37_v2, %v69_v19  ;;  %v70_v23 = vmul.f32 0.2, %v38_v4  ;;  %vm54_vm4 = vcmp.gt.f32.partialorder %v38_v4, 0.0  ;;  %vm179_vm5 = vcmask 39936   ;;  %s2654_s22 = smov [#allocation3]  }
   0xe   :  { %2288 = vmatpush3.msk.msra.mxu0 %vm1069_vm0, %v1004_v15  ;;  %v84_v28 = vsel %vm52_vm3, %v36_v3, %v68_v22  ;;  %v71_v30 = vmul.f32 0.2, %v2727_v5  ;;  %v72_v31 = vmul.f32 0.2, %v2732_v6  ;;  %vm55_vm6 = vcmp.gt.f32.partialorder %v2727_v5, 0.0  ;;  %s1874_s23 = sshll.u32 %s2654_s22, 4  ;;  %s1875_s23 = int_to_ptr.vmem [resolvable:$true] %s1874_s23 }
   0xf   :  { %v86_v29 = vsel %vm54_vm4, %v38_v4, %v70_v23  ;;  %vm56_vm7 = vcmp.gt.f32.partialorder %v2732_v6, 0.0  ;;  %v73_v40 = vmul.f32 0.2, %v2741_v7  ;;  %v74_v41 = vmul.f32 0.2, %v2746_v8  ;;  %s2624_s1 = scalar_lea.vmem %s1875_s23, 32  ;;  %p2625_p1 = scmp.lt.s32.totalorder %s1875_s23, %s1875_s23 }
  0x10   :  { %127 = vrot.lane.b32.xlu0 %v2741_v7, %s2644_s15  ;;  %129 = vrot.lane.b32.xlu1 %v2746_v8, %s2644_s15  ;;  %v87_v38 = vsel %vm55_vm6, %v2727_v5, %v71_v30  ;;  %v88_v39 = vsel %vm56_vm7, %v2732_v6, %v72_v31  ;;  %vm57_vm8 = vcmp.gt.f32.partialorder %v2741_v7, 0.0  ;;  %vm58_vm9 = vcmp.gt.f32.partialorder %v2746_v8, 0.0 }
  0x11   :  { %v89_v48 = vsel %vm57_vm8, %v2741_v7, %v73_v40  ;;  %v90_v49 = vsel %vm58_vm9, %v2746_v8, %v74_v41  ;;  %v75_v50 = vmul.f32 0.2, %v2755_v9  ;;  %v76_v51 = vmul.f32 0.2, %v2760_v10 }
  0x12   :  { %vm59_vm10 = vcmp.gt.f32.partialorder %v2755_v9, 0.0  ;;  %vm60_vm11 = vcmp.gt.f32.partialorder %v2760_v10, 0.0  ;;  %v77_v60 = vmul.f32 0.2, %v2769_v11  ;;  %v78_v61 = vmul.f32 0.2, %v2774_v12 }
  0x13   :  { %v91_v58 = vsel %vm59_vm10, %v2755_v9, %v75_v50  ;;  %v92_v59 = vsel %vm60_vm11, %v2760_v10, %v76_v51  ;;  %vm61_vm12 = vcmp.gt.f32.partialorder %v2769_v11, 0.0  ;;  %vm62_vm13 = vcmp.gt.f32.partialorder %v2774_v12, 0.0 }
  0x14   :  { %131 = vrot.lane.b32.xlu0 %v2755_v9, %s2644_s15  ;;  %133 = vrot.lane.b32.xlu1 %v2760_v10, %s2644_s15  ;;  %v80_v15 = vmul.f32 0.2, %v2788_v14  ;;  %vm63_vm14 = vcmp.gt.f32.partialorder %v2783_v13, 0.0  ;;  %vm64_vm15 = vcmp.gt.f32.partialorder %v2788_v14, 0.0  ;;  %vm65_vm0 = vcmp.gt.f32.partialorder %v2800_v16, 0.0 }
  0x15   :  { %vm66_vm1 = vcmp.gt.f32.partialorder %v2805_v17, 0.0  ;;  %vm1218_vm2 = vcmask 261120  }
  0x18   :  { %135 = vrot.lane.b32.xlu0 %v2769_v11, %s2644_s15  ;;  %137 = vrot.lane.b32.xlu1 %v2774_v12, %s2644_s15 }
  0x1c   :  { %139 = vrot.lane.b32.xlu0 %v2783_v13, %s2644_s15  ;;  %141 = vrot.lane.b32.xlu1 %v2788_v14, %s2644_s15 }
  0x20   :  { %143 = vrot.lane.b32.xlu0 %v2800_v16, %s2644_s15  ;;  %145 = vrot.lane.b32.xlu1 %v2805_v17, %s2644_s15 }
  0x24   :  { %1005 = vrot.lane.b32.xlu1 %v35_v1, %s2645_s3  ;;  %1007 = vrot.lane.b32.xlu0 %v36_v3, %s2645_s3 }
  0x28   :  { %1009 = vrot.lane.b32.xlu1 %v37_v2, %s2645_s3  ;;  %1013 = vrot.lane.b32.xlu0 %v2727_v5, %s2645_s3  ;;  %v94_v5 = vsel %vm62_vm13, %v2774_v12, %v78_v61 }
  0x2c   :  { %1011 = vrot.lane.b32.xlu1 %v38_v4, %s2645_s3  ;;  %v93_v4 = vsel %vm61_vm12, %v2769_v11, %v77_v60 }
  0x30   :  { %1015 = vrot.lane.b32.xlu1 %v2732_v6, %s2645_s3  ;;  %v79_v6 = vmul.f32 0.2, %v2783_v13 }
  0x76   :  { %v116_v24 = vpop.permute.xlu0 %115  ;;  %v120_v25 = vpop.permute.xlu1 %119 }
  0x77   :  { %v2819_v26 = vadd.f32 %v116_v24, %v83_v20  ;;  %v2821_v27 = vadd.f32 %v120_v25, %v85_v21  ;;  %v95_v24 = vsel %vm63_vm14, %v2783_v13, %v79_v6  ;;  %v96_v25 = vsel %vm64_vm15, %v2788_v14, %v80_v15 }
  0x79   :  { %v180_v32 = vsel %vm179_vm5, %v2819_v26, -inf  ;;  %v186_v37 = vsel %vm179_vm5, %v2821_v27, -inf }
  0x7a   :  { %v118_v33 = vpop.permute.xlu0 %117  ;;  %181 = vmax.xlane.f32.xlu0 %v180_v32  ;;  %v122_v34 = vpop.permute.xlu1 %121 }
  0x7b   :  { %v2829_v35 = vadd.f32 %v118_v33, %v84_v28  ;;  %v2831_v36 = vadd.f32 %v122_v34, %v86_v29  ;;  %v81_v28 = vmul.f32 0.2, %v2800_v16  ;;  %v82_v29 = vmul.f32 0.2, %v2805_v17 }
  0x7d   :  { %v183_v42 = vsel %vm179_vm5, %v2829_v35, -inf  ;;  %v189_v47 = vsel %vm179_vm5, %v2831_v36, -inf }
  0x7e   :  { %184 = vmax.xlane.f32.xlu1 %v183_v42  ;;  %v124_v43 = vpop.permute.xlu0 %123  ;;  %187 = vmax.xlane.f32.xlu0 %v186_v37  ;;  %v126_v44 = vpop.permute.xlu1 %125 }
  0x7f   :  { %v2843_v45 = vadd.f32 %v124_v43, %v87_v38  ;;  %v2845_v46 = vadd.f32 %v126_v44, %v88_v39  ;;  %v97_v38 = vsel %vm65_vm0, %v2800_v16, %v81_v28  ;;  %v98_v39 = vsel %vm66_vm1, %v2805_v17, %v82_v29 }
  0x81   :  { %v192_v52 = vsel %vm179_vm5, %v2843_v45, -inf  ;;  %v195_v57 = vsel %vm179_vm5, %v2845_v46, -inf }
  0x82   :  { %193 = vmax.xlane.f32.xlu1 %v192_v52  ;;  %v128_v53 = vpop.permute.xlu0 %127  ;;  %190 = vmax.xlane.f32.xlu0 %v189_v47  ;;  %v130_v54 = vpop.permute.xlu1 %129 }
  0x83   :  { %v2857_v55 = vadd.f32 %v128_v53, %v89_v48  ;;  %v2859_v56 = vadd.f32 %v130_v54, %v90_v49 }
  0x85   :  { %v198_v62 = vsel %vm179_vm5, %v2857_v55, -inf  ;;  %v201_v3 = vsel %vm179_vm5, %v2859_v56, -inf }
  0x86   :  { %199 = vmax.xlane.f32.xlu1 %v198_v62  ;;  %v132_v63 = vpop.permute.xlu0 %131  ;;  %196 = vmax.xlane.f32.xlu0 %v195_v57  ;;  %v134_v0 = vpop.permute.xlu1 %133 }
  0x87   :  { %v2871_v1 = vadd.f32 %v132_v63, %v91_v58  ;;  %v2873_v2 = vadd.f32 %v134_v0, %v92_v59 }
  0x89   :  { %v204_v18 = vsel %vm179_vm5, %v2871_v1, -inf  ;;  %v207_v23 = vsel %vm179_vm5, %v2873_v2, -inf }
  0x8a   :  { %205 = vmax.xlane.f32.xlu1 %v204_v18  ;;  %v136_v19 = vpop.permute.xlu0 %135  ;;  %202 = vmax.xlane.f32.xlu0 %v201_v3  ;;  %v138_v20 = vpop.permute.xlu1 %137 }
  0x8b   :  { %v2885_v21 = vadd.f32 %v136_v19, %v93_v4  ;;  %v2887_v22 = vadd.f32 %v138_v20, %v94_v5 }
  0x8d   :  { %v210_v30 = vsel %vm179_vm5, %v2885_v21, -inf  ;;  %v213_v37 = vsel %vm179_vm5, %v2887_v22, -inf }
  0x8e   :  { %211 = vmax.xlane.f32.xlu1 %v210_v30  ;;  %v140_v31 = vpop.permute.xlu0 %139  ;;  %208 = vmax.xlane.f32.xlu0 %v207_v23  ;;  %v142_v32 = vpop.permute.xlu1 %141 }
  0x8f   :  { %v2899_v33 = vadd.f32 %v140_v31, %v95_v24  ;;  %v2901_v34 = vadd.f32 %v142_v32, %v96_v25 }
  0x91   :  { %v216_v40 = vsel %vm179_vm5, %v2899_v33, -inf  ;;  %v219_v47 = vsel %vm179_vm5, %v2901_v34, -inf }
  0x92   :  { %217 = vmax.xlane.f32.xlu1 %v216_v40  ;;  %v144_v41 = vpop.permute.xlu0 %143  ;;  %214 = vmax.xlane.f32.xlu0 %v213_v37  ;;  %v146_v42 = vpop.permute.xlu1 %145 }
  0x93   :  { %v2909_v43 = vadd.f32 %v144_v41, %v97_v38  ;;  %v2911_v44 = vadd.f32 %v146_v42, %v98_v39 }
  0x95   :  { %v222_v48 = vsel %vm179_vm5, %v2909_v43, -inf  ;;  %v225_v51 = vsel %vm179_vm5, %v2911_v44, -inf }
  0x96   :  { %223 = vmax.xlane.f32.xlu1 %v222_v48  ;;  %220 = vmax.xlane.f32.xlu0 %v219_v47  ;;  %v1006_v49 = vpop.permute.xlu1 %1005  ;;  %v1008_v50 = vpop.permute.xlu0 %1007 }
  0x97   :  { %2289 = vmatprep.mubr.msk.f32.mxu0 %vm179_vm5, %v1006_v49 }
  0x98   :  { %2290 = vmatmul.mubr.msk.f32.vlgmr.msra.gmra.mrb[0].mxu0 %vm179_vm5, %v1008_v50 }
  0x9a   :  { %226 = vmax.xlane.f32.xlu0 %v225_v51  ;;  %v1010_v52 = vpop.permute.xlu1 %1009  ;;  %v1014_v53 = vpop.permute.xlu0 %1013 }
  0x9b   :  { %2292 = vmatprep.mubr.msk.f32.mxu0 %vm179_vm5, %v1010_v52 }
  0x9e   :  { %v1012_v54 = vpop.permute.xlu1 %1011 }
  0x9f   :  { %2293 = vmatmul.mubr.msk.f32.gmra.mrb[2].mxu0 %vm179_vm5, %v1012_v54 }
  0xa0   :  { %2295 = vmatprep.mubr.msk.f32.mxu0 %vm179_vm5, %v1014_v53 }
  0xa2   :  { %v1016_v57 = vpop.permute.xlu1 %1015 }
  0xa3   :  { %2296 = vmatmul.mubr.msk.f32.gmra.mrb[4].mxu0 %vm179_vm5, %v1016_v57 }
  0xa7   :  { %1019 = vrot.lane.b32.xlu1 %v2746_v8, %s2645_s3 }
  0xab   :  { %1021 = vrot.lane.b32.xlu1 %v2755_v9, %s2645_s3 }
  0xaf   :  { %1025 = vrot.lane.b32.xlu1 %v2769_v11, %s2645_s3 }
  0xb0   :  { %1017 = vrot.lane.b32.xlu0 %v2741_v7, %s2645_s3 }
  0xb3   :  { %1027 = vrot.lane.b32.xlu1 %v2774_v12, %s2645_s3 }
  0xb4   :  { %1023 = vrot.lane.b32.xlu0 %v2760_v10, %s2645_s3 }
  0xb7   :  { %1029 = vrot.lane.b32.xlu1 %v2783_v13, %s2645_s3 }
  0xb8   :  { %1031 = vrot.lane.b32.xlu0 %v2788_v14, %s2645_s3 }
  0xbb   :  { %1033 = vrot.lane.b32.xlu1 %v2800_v16, %s2645_s3 }
  0xbf   :  { %1035 = vrot.lane.b32.xlu1 %v2805_v17, %s2645_s3  ;;  %s2620_s3 = scalar_lea.vmem %s1875_s23, 16 }
  0xc0   :  { %p2621_p0 = scmp.ne.s32.totalorder %s1875_s23, %s2620_s3  ;;  %p2626_p2 = scmp.lt.s32.totalorder %s2624_s1, %s2620_s3 }
  0xc2   :  { %p2627_p3 = por %p2626_p2, %p2625_p1 }
  0xc4   :  { %p2628_p4 = pnand %p2627_p3, %p2621_p0 }
 0x107   :  { %v182_v8 = vpop.xlane.xlu0 %181 }
 0x108   :  { %v228_v7 = vsub.f32 %v2819_v26, %v182_v8 }
 0x10a   :  { %v244_v9 = vmul.f32 1.442695, %v228_v7 }
 0x10b   :  { %v185_v11 = vpop.xlane.xlu1 %184  ;;  %v188_v12 = vpop.xlane.xlu0 %187 }
 0x10c   :  { %2556 = vpow2.f32 %v244_v9  ;;  %v229_v10 = vsub.f32 %v2829_v35, %v185_v11  ;;  %v230_v13 = vsub.f32 %v2821_v27, %v188_v12 }
 0x10e   :  { %v246_v58 = vmul.f32 1.442695, %v229_v10  ;;  %v248_v59 = vmul.f32 1.442695, %v230_v13 }
 0x10f   :  { %v194_v14 = vpop.xlane.xlu1 %193  ;;  %v191_v60 = vpop.xlane.xlu0 %190 }
 0x110   :  { %2558 = vpow2.f32 %v246_v58  ;;  %v232_v16 = vsub.f32 %v2843_v45, %v194_v14  ;;  %v231_v17 = vsub.f32 %v2831_v36, %v191_v60 }
 0x111   :  { %2560 = vpow2.f32 %v248_v59 }
 0x112   :  { %v252_v61 = vmul.f32 1.442695, %v232_v16  ;;  %v250_v26 = vmul.f32 1.442695, %v231_v17 }
 0x113   :  { %v200_v62 = vpop.xlane.xlu1 %199  ;;  %v197_v63 = vpop.xlane.xlu0 %196 }
 0x114   :  { %2562 = vpow2.f32 %v252_v61  ;;  %v234_v0 = vsub.f32 %v2857_v55, %v200_v62  ;;  %v233_v35 = vsub.f32 %v2845_v46, %v197_v63 }
 0x115   :  { %2564 = vpow2.f32 %v250_v26 }
 0x116   :  { %v2952_v27 = vpop.eup %2556  ;;  %v256_v3 = vmul.f32 1.442695, %v234_v0  ;;  %v254_v4 = vmul.f32 1.442695, %v233_v35 }
 0x117   :  { %v206_v5 = vpop.xlane.xlu1 %205  ;;  %v203_v6 = vpop.xlane.xlu0 %202  ;;  %v276_v36 = vsel %vm179_vm5, %v2952_v27, 0.0 }
 0x118   :  { %2566 = vpow2.f32 %v256_v3  ;;  %v236_v45 = vsub.f32 %v2871_v1, %v206_v5  ;;  %v235_v15 = vsub.f32 %v2859_v56, %v203_v6  ;;  %277 = vadd.xlane.f32.xlu1 %v276_v36  ;;  %v2647_v5 = vmov 0  }
 0x119   :  { %2568 = vpow2.f32 %v254_v4  ;;  %v2646_v4 = vmov 1   ;;  %2487 = vset.pattern.permute.xlu0 %v2647_v5 }
 0x11a   :  { %v2958_v55 = vpop.eup %2558  ;;  %v260_v46 = vmul.f32 1.442695, %v236_v45  ;;  %v258_v18 = vmul.f32 1.442695, %v235_v15  ;;  %2488 = vset.pattern.permute.xlu1 %v2646_v4 }
 0x11b   :  { %v2960_v19 = vpop.eup %2560  ;;  %v212_v20 = vpop.xlane.xlu1 %211  ;;  %v279_v24 = vsel %vm179_vm5, %v2958_v55, 0.0 }
 0x11c   :  { %v209_v23 = vpop.xlane.xlu0 %208  ;;  %2570 = vpow2.f32 %v260_v46  ;;  %v238_v25 = vsub.f32 %v2885_v21, %v212_v20  ;;  %280 = vadd.xlane.f32.xlu0 %v279_v24  ;;  %v282_v56 = vsel %vm179_vm5, %v2960_v19, 0.0 }
 0x11d   :  { %v237_v1 = vsub.f32 %v2873_v2, %v209_v23  ;;  %2572 = vpow2.f32 %v258_v18  ;;  %283 = vadd.xlane.f32.xlu1 %v282_v56 }
 0x11e   :  { %v2968_v28 = vpop.eup %2562  ;;  %v264_v29 = vmul.f32 1.442695, %v238_v25 }
 0x11f   :  { %v262_v30 = vmul.f32 1.442695, %v237_v1  ;;  %v2970_v31 = vpop.eup %2564  ;;  %v218_v32 = vpop.xlane.xlu1 %217  ;;  %v288_v38 = vsel %vm179_vm5, %v2968_v28, 0.0 }
 0x120   :  { %v215_v37 = vpop.xlane.xlu0 %214  ;;  %2574 = vpow2.f32 %v264_v29  ;;  %v240_v2 = vsub.f32 %v2899_v33, %v218_v32  ;;  %v285_v39 = vsel %vm179_vm5, %v2970_v31, 0.0  ;;  %v2648_v32 = vmov 3  }
 0x121   :  { %v239_v21 = vsub.f32 %v2887_v22, %v215_v37  ;;  %2576 = vpow2.f32 %v262_v30  ;;  %289 = vadd.xlane.f32.xlu1 %v288_v38  ;;  %286 = vadd.xlane.f32.xlu0 %v285_v39  ;;  %v2649_v37 = vmov 2  }
 0x122   :  { %v2978_v40 = vpop.eup %2566  ;;  %v268_v41 = vmul.f32 1.442695, %v240_v2  ;;  %v1000_v2 = vld [vmem:[%s3449_s2] sm:$0xff] }
 0x123   :  { %v266_v42 = vmul.f32 1.442695, %v239_v21  ;;  %v2980_v47 = vpop.eup %2568  ;;  %v224_v48 = vpop.xlane.xlu1 %223  ;;  %v294_v50 = vsel %vm179_vm5, %v2978_v40, 0.0  ;;  %v1001_v21 = vld [vmem:[%s3449_s2 + $0x8] sm:$0xff] }
 0x124   :  { %v221_v49 = vpop.xlane.xlu0 %220  ;;  %2578 = vpow2.f32 %v268_v41  ;;  %v242_v22 = vsub.f32 %v2909_v43, %v224_v48  ;;  %v291_v51 = vsel %vm179_vm5, %v2980_v47, 0.0  ;;  %v2412_v41 = vpack.c.bf16 %v1001_v21, %v1000_v2 }
 0x125   :  { %v241_v33 = vsub.f32 %v2901_v34, %v221_v49  ;;  %2580 = vpow2.f32 %v266_v42  ;;  %295 = vadd.xlane.f32.xlu1 %v294_v50  ;;  %292 = vadd.xlane.f32.xlu0 %v291_v51  ;;  %v1003_v49 = vld [vmem:[%s3449_s2 + $0x18] sm:$0xff] }
 0x126   :  { %v2988_v52 = vpop.eup %2570  ;;  %v272_v53 = vmul.f32 1.442695, %v242_v22  ;;  %2413 = vmatprep.subr.bf16.mxu0 %v2412_v41 }
 0x127   :  { %v270_v54 = vmul.f32 1.442695, %v241_v33  ;;  %v2990_v57 = vpop.eup %2572  ;;  %v300_v7 = vsel %vm179_vm5, %v2988_v52, 0.0  ;;  %v1020_v9 = vpop.permute.xlu1 %1019  ;;  %2415 = vmatpush3.bf16.msra.mxu0 %v2412_v41 }
 0x128   :  { %v227_v8 = vpop.xlane.xlu0 %226  ;;  %2582 = vpow2.f32 %v272_v53  ;;  %v297_v43 = vsel %vm179_vm5, %v2990_v57, 0.0 }
 0x129   :  { %v243_v34 = vsub.f32 %v2911_v44, %v227_v8  ;;  %2584 = vpow2.f32 %v270_v54  ;;  %301 = vadd.xlane.f32.xlu1 %v300_v7  ;;  %298 = vadd.xlane.f32.xlu0 %v297_v43 }
 0x12a   :  { %v2997_v11 = vpop.eup %2574 }
 0x12b   :  { %v274_v12 = vmul.f32 1.442695, %v243_v34  ;;  %v2999_v10 = vpop.eup %2576  ;;  %v306_v13 = vsel %vm179_vm5, %v2997_v11, 0.0  ;;  %v1022_v59 = vpop.permute.xlu1 %1021 }
 0x12c   :  { %v1018_v58 = vpop.permute.xlu0 %1017  ;;  %v303_v44 = vsel %vm179_vm5, %v2999_v10, 0.0 }
 0x12d   :  { %2586 = vpow2.f32 %v274_v12  ;;  %2298 = vmatprep.mubr.msk.f32.mxu0 %vm179_vm5, %v1018_v58  ;;  %307 = vadd.xlane.f32.xlu1 %v306_v13 }
 0x12e   :  { %304 = vadd.xlane.f32.xlu0 %v303_v44  ;;  %v3006_v14 = vpop.eup %2578  ;;  %2299 = vmatmul.mubr.msk.f32.gmra.mrb[6].mxu0 %vm179_vm5, %v1020_v9 }
 0x12f   :  { %v3009_v60 = vpop.eup %2580  ;;  %v312_v16 = vsel %vm179_vm5, %v3006_v14, 0.0  ;;  %2301 = vmatprep.mubr.msk.f32.mxu0 %vm179_vm5, %v1022_v59  ;;  %v1026_v61 = vpop.permute.xlu1 %1025 }
 0x130   :  { %v1024_v17 = vpop.permute.xlu0 %1023  ;;  %v309_v26 = vsel %vm179_vm5, %v3009_v60, 0.0 }
 0x131   :  { %313 = vadd.xlane.f32.xlu1 %v312_v16 }
 0x132   :  { %310 = vadd.xlane.f32.xlu0 %v309_v26  ;;  %v3016_v62 = vpop.eup %2582  ;;  %2302 = vmatmul.mubr.msk.f32.gmra.mrb[8].mxu0 %vm179_vm5, %v1024_v17 }
 0x133   :  { %v3019_v63 = vpop.eup %2584  ;;  %v318_v0 = vsel %vm179_vm5, %v3016_v62, 0.0  ;;  %2304 = vmatprep.mubr.msk.f32.mxu0 %vm179_vm5, %v1026_v61  ;;  %v1028_v35 = vpop.permute.xlu1 %1027 }
 0x134   :  { %v315_v3 = vsel %vm179_vm5, %v3019_v63, 0.0  ;;  %v1032_v15 = vpop.permute.xlu0 %1031 }
 0x135   :  { %319 = vadd.xlane.f32.xlu1 %v318_v0 }
 0x136   :  { %316 = vadd.xlane.f32.xlu0 %v315_v3  ;;  %2305 = vmatmul.mubr.msk.f32.gmra.mrb[10].mxu0 %vm179_vm5, %v1028_v35 }
 0x137   :  { %v3028_v6 = vpop.eup %2586  ;;  %v1030_v45 = vpop.permute.xlu1 %1029 }
 0x138   :  { %v321_v36 = vsel %vm179_vm5, %v3028_v6, 0.0  ;;  %2307 = vmatprep.mubr.msk.f32.mxu0 %vm179_vm5, %v1030_v45 }
 0x13a   :  { %322 = vadd.xlane.f32.xlu0 %v321_v36  ;;  %2308 = vmatmul.mubr.msk.f32.gmra.mrb[12].mxu0 %vm179_vm5, %v1032_v15  ;;  %v2015_v15 = vld [vmem:[%s3447_s0] sm:$0xff]  }
 0x13b   :  { %v1034_v46 = vpop.permute.xlu1 %1033 }
 0x13c   :  { %2310 = vmatprep.mubr.msk.f32.mxu0 %vm179_vm5, %v1034_v46 }
 0x13f   :  { %v1036_v18 = vpop.permute.xlu1 %1035 }
 0x140   :  { %2311 = vmatmul.mubr.msk.f32.gmra.mrb[14].mxu0 %vm179_vm5, %v1036_v18 }
 0x1a5   :  { %v278_v20 = vpop.xlane.xlu1 %277 }
 0x1a6   :  { %2588 = vrcp.f32 %v278_v20  ;;  %v2016_v20 = vunpack.c.l.bf16 %v2015_v15 }
 0x1a9   :  { %v281_v23 = vpop.xlane.xlu0 %280 }
 0x1aa   :  { %2590 = vrcp.f32 %v281_v23  ;;  %v284_v56 = vpop.xlane.xlu1 %283  ;;  %v2189_v23 = vld [vmem:[%s3447_s0 + $0x80] sm:$0xff]  }
 0x1ab   :  { %2592 = vrcp.f32 %v284_v56  ;;  %v2197_v56 = vld [vmem:[%s3447_s0 + $0xc0] sm:$0xff]  }
 0x1ae   :  { %v287_v30 = vpop.xlane.xlu0 %286  ;;  %v290_v42 = vpop.xlane.xlu1 %289 }
 0x1af   :  { %2594 = vrcp.f32 %v287_v30 }
 0x1b0   :  { %v2589_v24 = vpop.eup %2588  ;;  %2596 = vrcp.f32 %v290_v42 }
 0x1b1   :  { %v340_v25 = vmul.f32 %v2589_v24, %v2952_v27  ;;  %v2650_v27 = vmov 4  }
 0x1b3   :  { %518 = vperm.xlu1 %2488, %v340_v25   ;;  %390 = vperm.xlu0 %2487, %v340_v25  }
 0x1b4   :  { %v2591_v1 = vpop.eup %2590 }
 0x1b5   :  { %v341_v29 = vmul.f32 %v2591_v1, %v2958_v55  ;;  %v2593_v55 = vpop.eup %2592 }
 0x1b6   :  { %v342_v38 = vmul.f32 %v2593_v55, %v2960_v19  ;;  %v1002_v19 = vld [vmem:[%s3449_s2 + $0x10] sm:$0xff]  ;;  %v2080_v55 = vunpack.c.l.bf16 %v2189_v23 }
 0x1b7   :  { %2489 = vset.pattern.permute.xlu1 %v2647_v5  ;;  %2490 = vset.pattern.permute.xlu0 %v2646_v4  ;;  %v2416_v50 = vpack.c.bf16 %v1003_v49, %v1002_v19 }
 0x1b8   :  { %522 = vperm.xlu0 %2490, %v341_v29   ;;  %395 = vperm.xlu1 %2489, %v341_v29  }
 0x1b9   :  { %v2595_v39 = vpop.eup %2594  ;;  %2417 = vmatprep.subr.bf16.mxu0 %v2416_v50 }
 0x1ba   :  { %v343_v48 = vmul.f32 %v2595_v39, %v2970_v31  ;;  %v293_v31 = vpop.xlane.xlu0 %292  ;;  %2419 = vmatpush3.bf16.msra.mxu0 %v2416_v50  ;;  %v2597_v22 = vpop.eup %2596 }
 0x1bb   :  { %2598 = vrcp.f32 %v293_v31  ;;  %v344_v33 = vmul.f32 %v2597_v22, %v2968_v28  ;;  %v296_v28 = vpop.xlane.xlu1 %295 }
 0x1bc   :  { %2492 = vset.pattern.permute.xlu0 %v2648_v32  ;;  %2491 = vset.pattern.permute.xlu1 %v2649_v37 }
 0x1bd   :  { %776 = vperm.xlu0 %2492, %v340_v25   ;;  %647 = vperm.xlu1 %2491, %v340_v25  }
 0x1be   :  { %v299_v53 = vpop.xlane.xlu0 %298 }
 0x1bf   :  { %2600 = vrcp.f32 %v299_v53 }
 0x1c0   :  { %2602 = vrcp.f32 %v296_v28 }
 0x1c1   :  { %2494 = vset.pattern.permute.xlu0 %v2650_v27  ;;  %651 = vperm.xlu1 %2491, %v341_v29  }
 0x1c2   :  { %905 = vperm.xlu0 %2494, %v340_v25   ;;  %v305_v34 = vpop.xlane.xlu0 %304 }
 0x1c5   :  { %2493 = vset.pattern.permute.xlu1 %v2648_v32  ;;  %v2599_v51 = vpop.eup %2598 }
 0x1c6   :  { %2496 = vset.pattern.permute.xlu0 %v2647_v5  ;;  %780 = vperm.xlu1 %2493, %v341_v29   ;;  %v345_v54 = vmul.f32 %v2599_v51, %v2980_v47  ;;  %v302_v47 = vpop.xlane.xlu1 %301  ;;  %v311_v58 = vpop.xlane.xlu0 %310 }
 0x1c7   :  { %400 = vperm.xlu0 %2496, %v342_v38   ;;  %2604 = vrcp.f32 %v302_v47 }
 0x1c8   :  { %2606 = vrcp.f32 %v305_v34 }
 0x1c9   :  { %v2601_v8 = vpop.eup %2600 }
 0x1ca   :  { %2495 = vset.pattern.permute.xlu1 %v2650_v27  ;;  %v3077_v7 = vmul.f32 %v2601_v8, %v2990_v57  ;;  %v2603_v9 = vpop.eup %2602  ;;  %v308_v12 = vpop.xlane.xlu1 %307  ;;  %v2113_v8 = vunpack.c.h.bf16 %v2197_v56 }
 0x1cb   :  { %2499 = vset.pattern.permute.xlu0 %v2646_v4  ;;  %909 = vperm.xlu1 %2495, %v341_v29   ;;  %v346_v57 = vmul.f32 %v2603_v9, %v2978_v40  ;;  %2608 = vrcp.f32 %v308_v12 }
 0x1cc   :  { %530 = vperm.xlu0 %2499, %v343_v48   ;;  %2610 = vrcp.f32 %v311_v58 }
 0x1cf   :  { %2497 = vset.pattern.permute.xlu1 %v2646_v4 }
 0x1d0   :  { %526 = vperm.xlu1 %2497, %v342_v38   ;;  %2501 = vset.pattern.permute.xlu0 %v2648_v32 }
 0x1d1   :  { %784 = vperm.xlu0 %2501, %v342_v38   ;;  %v2605_v43 = vpop.eup %2604 }
 0x1d2   :  { %v3088_v13 = vmul.f32 %v2605_v43, %v2988_v52  ;;  %v2607_v40 = vpop.eup %2606 }
 0x1d3   :  { %v3097_v52 = vmul.f32 %v2607_v40, %v2999_v10  ;;  %v317_v10 = vpop.xlane.xlu0 %316 }
 0x1d4   :  { %2498 = vset.pattern.permute.xlu1 %v2647_v5  ;;  %2612 = vrcp.f32 %v317_v10 }
 0x1d5   :  { %2503 = vset.pattern.permute.xlu0 %v2650_v27  ;;  %405 = vperm.xlu1 %2498, %v343_v48   ;;  %v2609_v59 = vpop.eup %2608 }
 0x1d6   :  { %913 = vperm.xlu0 %2503, %v342_v38   ;;  %v3103_v44 = vmul.f32 %v2609_v59, %v2997_v11  ;;  %v2611_v16 = vpop.eup %2610  ;;  %v314_v11 = vpop.xlane.xlu1 %313 }
 0x1d7   :  { %v3109_v17 = vmul.f32 %v2611_v16, %v3009_v60  ;;  %2614 = vrcp.f32 %v314_v11  ;;  %v323_v35 = vpop.xlane.xlu0 %322 }
 0x1d9   :  { %2500 = vset.pattern.permute.xlu1 %v2649_v37 }
 0x1da   :  { %2505 = vset.pattern.permute.xlu0 %v2647_v5  ;;  %655 = vperm.xlu1 %2500, %v342_v38   ;;  %v320_v60 = vpop.xlane.xlu1 %319  ;;  %v2112_v38 = vunpack.c.l.bf16 %v2197_v56 }
 0x1db   :  { %410 = vperm.xlu0 %2505, %v344_v33   ;;  %2616 = vrcp.f32 %v320_v60 }
 0x1dc   :  { %2618 = vrcp.f32 %v323_v35 }
 0x1de   :  { %659 = vperm.xlu1 %2500, %v343_v48   ;;  %v2613_v61 = vpop.eup %2612 }
 0x1df   :  { %2508 = vset.pattern.permute.xlu0 %v2646_v4  ;;  %v3121_v26 = vmul.f32 %v2613_v61, %v3019_v63  ;;  %v2182_v61 = vld [vmem:[%s3447_s0 + $0x48] sm:$0xff]  }
 0x1e0   :  { %538 = vperm.xlu0 %2508, %v345_v54   ;;  %v2052_v60 = vunpack.c.l.bf16 %v2182_v61 }
 0x1e1   :  { %v2615_v0 = vpop.eup %2614 }
 0x1e2   :  { %2502 = vset.pattern.permute.xlu1 %v2648_v32  ;;  %v3131_v63 = vmul.f32 %v2615_v0, %v3006_v14  ;;  %v2181_v14 = vld [vmem:[%s3447_s0 + $0x40] sm:$0xff]   ;;  %v2190_v0 = vld [vmem:[%s3447_s0 + $0x88] sm:$0xff]  }
 0x1e3   :  { %788 = vperm.xlu1 %2502, %v343_v48   ;;  %v2048_v18 = vunpack.c.l.bf16 %v2181_v14  ;;  %v2049_v19 = vunpack.c.h.bf16 %v2181_v14  ;;  %v2198_v14 = vld [vmem:[%s3447_s0 + $0xc8] sm:$0xff]  }
 0x1e4   :  { %2510 = vset.pattern.permute.xlu0 %v2648_v32 }
 0x1e5   :  { %792 = vperm.xlu0 %2510, %v344_v33   ;;  %v2617_v3 = vpop.eup %2616 }
 0x1e6   :  { %v3138_v36 = vmul.f32 %v2617_v3, %v3016_v62  ;;  %v2619_v62 = vpop.eup %2618 }
 0x1e7   :  { %2504 = vset.pattern.permute.xlu1 %v2650_v27  ;;  %v3157_v1 = vmul.f32 %v2619_v62, %v3028_v6  ;;  %v2205_v6 = vld [vmem:[%s3447_s0 + $0x100] sm:$0xff]   ;;  %v2206_v62 = vld [vmem:[%s3447_s0 + $0x108] sm:$0xff]  }
 0x1e8   :  { %917 = vperm.xlu1 %2504, %v343_v48   ;;  %v2144_v42 = vunpack.c.l.bf16 %v2205_v6  ;;  %v2017_v48 = vunpack.c.h.bf16 %v2015_v15  ;;  %v2145_v43 = vunpack.c.h.bf16 %v2205_v6 }
 0x1e9   :  { %2513 = vset.pattern.permute.xlu0 %v2650_v27 }
 0x1ea   :  { %925 = vperm.xlu0 %2513, %v345_v54  }
 0x1ec   :  { %2506 = vset.pattern.permute.xlu1 %v2646_v4 }
 0x1ed   :  { %534 = vperm.xlu1 %2506, %v344_v33  }
 0x1ee   :  { %2516 = vset.pattern.permute.xlu0 %v2647_v5 }
 0x1ef   :  { %425 = vperm.xlu0 %2516, %v3077_v7  }
 0x1f1   :  { %2507 = vset.pattern.permute.xlu1 %v2647_v5 }
 0x1f2   :  { %415 = vperm.xlu1 %2507, %v345_v54  }
 0x1f3   :  { %2518 = vset.pattern.permute.xlu0 %v2649_v37 }
 0x1f4   :  { %675 = vperm.xlu0 %2518, %v3077_v7  }
 0x1f6   :  { %2509 = vset.pattern.permute.xlu1 %v2649_v37 }
 0x1f7   :  { %663 = vperm.xlu1 %2509, %v344_v33  }
 0x1f8   :  { %2520 = vset.pattern.permute.xlu0 %v2650_v27 }
 0x1f9   :  { %929 = vperm.xlu0 %2520, %v346_v57  }
 0x1fb   :  { %667 = vperm.xlu1 %2509, %v345_v54  }
 0x1fd   :  { %2523 = vset.pattern.permute.xlu0 %v2646_v4 }
 0x1fe   :  { %550 = vperm.xlu0 %2523, %v3088_v13  }
 0x1ff   :  { %2511 = vset.pattern.permute.xlu1 %v2648_v32 }
 0x200   :  { %796 = vperm.xlu1 %2511, %v345_v54  }
 0x202   :  { %2525 = vset.pattern.permute.xlu0 %v2649_v37 }
 0x203   :  { %679 = vperm.xlu0 %2525, %v3088_v13  }
 0x204   :  { %2512 = vset.pattern.permute.xlu1 %v2650_v27 }
 0x205   :  { %921 = vperm.xlu1 %2512, %v344_v33   ;;  %v2081_v33 = vunpack.c.h.bf16 %v2189_v23 }
 0x207   :  { %2528 = vset.pattern.permute.xlu0 %v2648_v32 }
 0x208   :  { %812 = vperm.xlu0 %2528, %v3097_v52  }
 0x209   :  { %2514 = vset.pattern.permute.xlu1 %v2647_v5 }
 0x20a   :  { %420 = vperm.xlu1 %2514, %v346_v57  }
 0x20c   :  { %2530 = vset.pattern.permute.xlu0 %v2647_v5 }
 0x20d   :  { %440 = vperm.xlu0 %2530, %v3103_v44  }
 0x20e   :  { %2515 = vset.pattern.permute.xlu1 %v2646_v4 }
 0x20f   :  { %542 = vperm.xlu1 %2515, %v346_v57  }
 0x211   :  { %2533 = vset.pattern.permute.xlu0 %v2646_v4 }
 0x212   :  { %562 = vperm.xlu0 %2533, %v3109_v17  }
 0x213   :  { %546 = vperm.xlu1 %2515, %v3077_v7  }
 0x216   :  { %2535 = vset.pattern.permute.xlu0 %v2648_v32 }
 0x217   :  { %2517 = vset.pattern.permute.xlu1 %v2649_v37  ;;  %816 = vperm.xlu0 %2535, %v3103_v44  }
 0x218   :  { %671 = vperm.xlu1 %2517, %v346_v57  }
 0x21b   :  { %2538 = vset.pattern.permute.xlu0 %v2650_v27 }
 0x21c   :  { %2519 = vset.pattern.permute.xlu1 %v2648_v32  ;;  %949 = vperm.xlu0 %2538, %v3109_v17  }
 0x21d   :  { %800 = vperm.xlu1 %2519, %v346_v57  }
 0x220   :  { %2541 = vset.pattern.permute.xlu0 %v2647_v5 }
 0x221   :  { %804 = vperm.xlu1 %2519, %v3077_v7   ;;  %455 = vperm.xlu0 %2541, %v3121_v26  }
 0x225   :  { %2521 = vset.pattern.permute.xlu1 %v2650_v27  ;;  %2543 = vset.pattern.permute.xlu0 %v2649_v37 }
 0x226   :  { %933 = vperm.xlu1 %2521, %v3077_v7   ;;  %699 = vperm.xlu0 %2543, %v3121_v26  }
 0x22a   :  { %2522 = vset.pattern.permute.xlu1 %v2647_v5  ;;  %2545 = vset.pattern.permute.xlu0 %v2650_v27 }
 0x22b   :  { %430 = vperm.xlu1 %2522, %v3088_v13   ;;  %953 = vperm.xlu0 %2545, %v3131_v63  }
 0x22f   :  { %435 = vperm.xlu1 %2522, %v3097_v52   ;;  %2548 = vset.pattern.permute.xlu0 %v2646_v4 }
 0x230   :  { %574 = vperm.xlu0 %2548, %v3138_v36  }
 0x232   :  { %v519_v45 = vpop.permute.xlu1 %518  ;;  %v391_v46 = vpop.permute.xlu0 %390 }
 0x233   :  { %2524 = vset.pattern.permute.xlu1 %v2646_v4  ;;  %v581_v29 = vmul.f32 %v2048_v18, %v519_v45  ;;  %v468_v30 = vmul.f32 %v2016_v20, %v391_v46  ;;  %v2084_v46 = vunpack.c.l.bf16 %v2190_v0  ;;  %v2116_v20 = vunpack.c.l.bf16 %v2198_v14 }
 0x234   :  { %554 = vperm.xlu1 %2524, %v3097_v52   ;;  %2550 = vset.pattern.permute.xlu0 %v2649_v37 }
 0x235   :  { %703 = vperm.xlu0 %2550, %v3138_v36   ;;  %v597_v39 = vadd.f32 %v581_v29, %v468_v30 }
 0x237   :  { %v396_v24 = vpop.permute.xlu1 %395  ;;  %v523_v25 = vpop.permute.xlu0 %522 }
 0x238   :  { %2526 = vset.pattern.permute.xlu1 %v2649_v37  ;;  %v469_v54 = vmul.f32 %v2017_v48, %v396_v24  ;;  %v582_v28 = vmul.f32 %v2049_v19, %v523_v25  ;;  %v2148_v25 = vunpack.c.l.bf16 %v2206_v62  ;;  %v2117_v19 = vunpack.c.h.bf16 %v2198_v14 }
 0x239   :  { %683 = vperm.xlu1 %2526, %v3097_v52   ;;  %2553 = vset.pattern.permute.xlu0 %v2648_v32 }
 0x23a   :  { %836 = vperm.xlu0 %2553, %v3157_v1   ;;  %v598_v34 = vadd.f32 %v582_v28, %v469_v54 }
 0x23c   :  { %v648_v2 = vpop.permute.xlu1 %647  ;;  %v777_v21 = vpop.permute.xlu0 %776 }
 0x23d   :  { %v710_v41 = vmul.f32 %v2080_v55, %v648_v2  ;;  %2527 = vset.pattern.permute.xlu1 %v2648_v32  ;;  %v839_v50 = vmul.f32 %v2112_v38, %v777_v21  ;;  %v2053_v2 = vunpack.c.h.bf16 %v2182_v61 }
 0x23e   :  { %808 = vperm.xlu1 %2527, %v3088_v13   ;;  %2555 = vset.pattern.permute.xlu0 %v2647_v5 }
 0x23f   :  { %v726_v49 = vadd.f32 %v710_v41, %v597_v39  ;;  %v2085_v41 = vunpack.c.h.bf16 %v2190_v0 }
 0x240   :  { %v652_v31 = vpop.permute.xlu1 %651 }
 0x241   :  { %v855_v22 = vadd.f32 %v839_v50, %v726_v49  ;;  %v906_v51 = vpop.permute.xlu0 %905  ;;  %v711_v7 = vmul.f32 %v2081_v33, %v652_v31 }
 0x242   :  { %v968_v53 = vmul.f32 %v2144_v42, %v906_v51  ;;  %2529 = vset.pattern.permute.xlu1 %v2650_v27  ;;  %v2149_v51 = vunpack.c.h.bf16 %v2206_v62  ;;  %v2207_v62 = vld [vmem:[%s3447_s0 + $0x110] sm:$0xff]  }
 0x243   :  { %937 = vperm.xlu1 %2529, %v3088_v13   ;;  %v727_v12 = vadd.f32 %v711_v7, %v598_v34  ;;  %v2183_v34 = vld [vmem:[%s3447_s0 + $0x50] sm:$0xff]  }
 0x244   :  { %v984_v47 = vadd.f32 %v968_v53, %v855_v22 }
 0x245   :  { %v781_v9 = vpop.permute.xlu1 %780 }
 0x246   :  { %2321 = vmatprep.mubr.msk.f32.mxu0 %vm1218_vm2, %v984_v47  ;;  %v840_v57 = vmul.f32 %v2113_v8, %v781_v9  ;;  %v401_v58 = vpop.permute.xlu0 %400 }
 0x247   :  { %941 = vperm.xlu1 %2529, %v3097_v52   ;;  %v2174_v52 = vld [vmem:[%s3447_s0 + $0x8] sm:$0xff]  }
 0x248   :  { %v856_v59 = vadd.f32 %v840_v57, %v727_v12  ;;  %v2020_v35 = vunpack.c.l.bf16 %v2174_v52  ;;  %v2021_v55 = vunpack.c.h.bf16 %v2174_v52  ;;  %v2191_v57 = vld [vmem:[%s3447_s0 + $0x90] sm:$0xff]  }
 0x249   :  { %v2199_v52 = vld [vmem:[%s3447_s0 + $0xd0] sm:$0xff]  }
 0x24a   :  { %v910_v40 = vpop.permute.xlu1 %909  ;;  %v470_v18 = vmul.f32 %v2020_v35, %v401_v58  ;;  %v2056_v58 = vunpack.c.l.bf16 %v2183_v34  ;;  %v2121_v0 = vunpack.c.h.bf16 %v2199_v52 }
 0x24b   :  { %v969_v16 = vmul.f32 %v2145_v43, %v910_v40  ;;  %2531 = vset.pattern.permute.xlu1 %v2646_v4  ;;  %v531_v10 = vpop.permute.xlu0 %530 }
 0x24c   :  { %558 = vperm.xlu1 %2531, %v3103_v44   ;;  %v584_v49 = vmul.f32 %v2053_v2, %v531_v10  ;;  %v2089_v10 = vunpack.c.h.bf16 %v2191_v57 }
 0x24d   :  { %v985_v13 = vadd.f32 %v969_v16, %v856_v59  ;;  %v2088_v16 = vunpack.c.l.bf16 %v2191_v57 }
 0x24f   :  { %v527_v11 = vpop.permute.xlu1 %526  ;;  %2322 = vmatmul.mubr.msk.f32.vlgmr.msra.gmra.mrb[0].mxu0 %vm1218_vm2, %v985_v13  ;;  %v2057_v13 = vunpack.c.h.bf16 %v2183_v34 }
 0x250   :  { %2532 = vset.pattern.permute.xlu1 %v2647_v5  ;;  %v785_v45 = vpop.permute.xlu0 %784  ;;  %v583_v15 = vmul.f32 %v2052_v60, %v527_v11 }
 0x251   :  { %445 = vperm.xlu1 %2532, %v3109_v17   ;;  %v841_v30 = vmul.f32 %v2116_v20, %v785_v45 }
 0x252   :  { %v599_v24 = vadd.f32 %v583_v15, %v470_v18 }
 0x254   :  { %v406_v3 = vpop.permute.xlu1 %405 }
 0x255   :  { %2534 = vset.pattern.permute.xlu1 %v2649_v37  ;;  %v914_v29 = vpop.permute.xlu0 %913  ;;  %v471_v42 = vmul.f32 %v2021_v55, %v406_v3 }
 0x256   :  { %687 = vperm.xlu1 %2534, %v3103_v44   ;;  %v970_v21 = vmul.f32 %v2148_v25, %v914_v29 }
 0x257   :  { %v600_v22 = vadd.f32 %v584_v49, %v471_v42 }
 0x259   :  { %v656_v23 = vpop.permute.xlu1 %655 }
 0x25a   :  { %v712_v56 = vmul.f32 %v2084_v46, %v656_v23  ;;  %691 = vperm.xlu1 %2534, %v3109_v17   ;;  %v411_v7 = vpop.permute.xlu0 %410  ;;  %v2120_v46 = vunpack.c.l.bf16 %v2199_v52 }
 0x25c   :  { %v728_v38 = vadd.f32 %v712_v56, %v599_v24  ;;  %v2152_v56 = vunpack.c.l.bf16 %v2207_v62 }
 0x25d   :  { %v660_v6 = vpop.permute.xlu1 %659 }
 0x25e   :  { %v857_v39 = vadd.f32 %v841_v30, %v728_v38  ;;  %2536 = vset.pattern.permute.xlu1 %v2648_v32  ;;  %v713_v50 = vmul.f32 %v2085_v41, %v660_v6 }
 0x25f   :  { %820 = vperm.xlu1 %2536, %v3109_v17   ;;  %v539_v12 = vpop.permute.xlu0 %538 }
 0x260   :  { %v986_v48 = vadd.f32 %v970_v21, %v857_v39  ;;  %v729_v53 = vadd.f32 %v713_v50, %v600_v22  ;;  %v586_v45 = vmul.f32 %v2057_v13, %v539_v12  ;;  %v2192_v22 = vld [vmem:[%s3447_s0 + $0x98] sm:$0xff]  }
 0x262   :  { %v789_v31 = vpop.permute.xlu1 %788  ;;  %2324 = vmatprep.mubr.msk.f32.mxu0 %vm1218_vm2, %v986_v48 }
 0x263   :  { %2537 = vset.pattern.permute.xlu1 %v2650_v27  ;;  %v842_v33 = vmul.f32 %v2117_v19, %v789_v31 }
 0x264   :  { %945 = vperm.xlu1 %2537, %v3103_v44   ;;  %v2175_v44 = vld [vmem:[%s3447_s0 + $0x10] sm:$0xff]   ;;  %v793_v3 = vpop.permute.xlu0 %792 }
 0x265   :  { %v858_v28 = vadd.f32 %v842_v33, %v729_v53  ;;  %v2025_v40 = vunpack.c.h.bf16 %v2175_v44  ;;  %v2024_v59 = vunpack.c.l.bf16 %v2175_v44  ;;  %v843_v30 = vmul.f32 %v2120_v46, %v793_v3 }
 0x267   :  { %v918_v54 = vpop.permute.xlu1 %917  ;;  %v472_v35 = vmul.f32 %v2024_v59, %v411_v7 }
 0x268   :  { %v971_v8 = vmul.f32 %v2149_v51, %v918_v54  ;;  %2539 = vset.pattern.permute.xlu1 %v2647_v5  ;;  %v2092_v51 = vunpack.c.l.bf16 %v2192_v22  ;;  %v2200_v54 = vld [vmem:[%s3447_s0 + $0xd8] sm:$0xff]  }
 0x269   :  { %450 = vperm.xlu1 %2539, %v3131_v63   ;;  %v926_v55 = vpop.permute.xlu0 %925  ;;  %v2125_v13 = vunpack.c.h.bf16 %v2200_v54 }
 0x26a   :  { %v987_v17 = vadd.f32 %v971_v8, %v858_v28  ;;  %v2208_v8 = vld [vmem:[%s3447_s0 + $0x118] sm:$0xff]  }
 0x26b   :  { %v2156_v34 = vunpack.c.l.bf16 %v2208_v8 }
 0x26c   :  { %v535_v47 = vpop.permute.xlu1 %534  ;;  %2325 = vmatmul.mubr.msk.f32.gmra.mrb[2].mxu0 %vm1218_vm2, %v987_v17 }
 0x26d   :  { %2540 = vset.pattern.permute.xlu1 %v2646_v4  ;;  %v585_v61 = vmul.f32 %v2056_v58, %v535_v47 }
 0x26e   :  { %566 = vperm.xlu1 %2540, %v3131_v63   ;;  %v426_v49 = vpop.permute.xlu0 %425 }
 0x26f   :  { %v601_v18 = vadd.f32 %v585_v61, %v472_v35 }
 0x271   :  { %v416_v9 = vpop.permute.xlu1 %415 }
 0x272   :  { %570 = vperm.xlu1 %2540, %v3121_v26   ;;  %v473_v60 = vmul.f32 %v2025_v40, %v416_v9  ;;  %v2124_v9 = vunpack.c.l.bf16 %v2200_v54 }
 0x273   :  { %v676_v53 = vpop.permute.xlu0 %675 }
 0x274   :  { %v602_v23 = vadd.f32 %v586_v45, %v473_v60 }
 0x276   :  { %v664_v43 = vpop.permute.xlu1 %663  ;;  %2542 = vset.pattern.permute.xlu1 %v2649_v37 }
 0x277   :  { %695 = vperm.xlu1 %2542, %v3131_v63   ;;  %v714_v14 = vmul.f32 %v2088_v16, %v664_v43  ;;  %v2093_v16 = vunpack.c.h.bf16 %v2192_v22 }
 0x278   :  { %v930_v43 = vpop.permute.xlu0 %929 }
 0x279   :  { %v730_v25 = vadd.f32 %v714_v14, %v601_v18  ;;  %v717_v35 = vmul.f32 %v2093_v16, %v676_v53  ;;  %v2157_v14 = vunpack.c.h.bf16 %v2208_v8 }
 0x27a   :  { %v668_v11 = vpop.permute.xlu1 %667 }
 0x27b   :  { %2544 = vset.pattern.permute.xlu1 %v2648_v32  ;;  %v715_v15 = vmul.f32 %v2089_v10, %v668_v11  ;;  %v859_v2 = vadd.f32 %v843_v30, %v730_v25  ;;  %v974_v10 = vmul.f32 %v2156_v34, %v930_v43 }
 0x27c   :  { %824 = vperm.xlu1 %2544, %v3131_v63   ;;  %v2153_v63 = vunpack.c.h.bf16 %v2207_v62  ;;  %v1486_v62 = vld [vmem:[%s3452_s5 + $0x18] sm:$0xff] }
 0x27d   :  { %v731_v29 = vadd.f32 %v715_v15, %v602_v23 }
 0x27e   :  { %v973_v39 = vmul.f32 %v2153_v63, %v926_v55  ;;  %v551_v55 = vpop.permute.xlu0 %550 }
 0x27f   :  { %v797_v20 = vpop.permute.xlu1 %796 }
 0x280   :  { %v844_v24 = vmul.f32 %v2121_v0, %v797_v20  ;;  %828 = vperm.xlu1 %2544, %v3121_v26   ;;  %v1483_v0 = vld [vmem:[%s3452_s5] sm:$0xff] }
 0x282   :  { %v860_v38 = vadd.f32 %v844_v24, %v731_v29  ;;  %v2185_v29 = vld [vmem:[%s3447_s0 + $0x60] sm:$0xff]  }
 0x284   :  { %v922_v6 = vpop.permute.xlu1 %921  ;;  %2546 = vset.pattern.permute.xlu1 %v2650_v27  ;;  %v989_v42 = vadd.f32 %v973_v39, %v860_v38  ;;  %v2193_v38 = vld [vmem:[%s3447_s0 + $0xa0] sm:$0xff]  }
 0x285   :  { %v972_v21 = vmul.f32 %v2152_v56, %v922_v6  ;;  %957 = vperm.xlu1 %2546, %v3121_v26   ;;  %v2184_v26 = vld [vmem:[%s3447_s0 + $0x58] sm:$0xff]   ;;  %v2177_v56 = vld [vmem:[%s3447_s0 + $0x20] sm:$0xff]   ;;  %v2096_v39 = vunpack.c.l.bf16 %v2193_v38 }
 0x286   :  { %v2060_v31 = vunpack.c.l.bf16 %v2184_v26  ;;  %v2061_v17 = vunpack.c.h.bf16 %v2184_v26  ;;  %v2032_v30 = vunpack.c.l.bf16 %v2177_v56  ;;  %v2209_v26 = vld [vmem:[%s3447_s0 + $0x120] sm:$0xff]  }
 0x287   :  { %v988_v41 = vadd.f32 %v972_v21, %v859_v2  ;;  %v2065_v21 = vunpack.c.h.bf16 %v2185_v29 }
 0x289   :  { %v421_v48 = vpop.permute.xlu1 %420  ;;  %2547 = vset.pattern.permute.xlu1 %v2647_v5  ;;  %2327 = vmatprep.mubr.msk.f32.mxu0 %vm1218_vm2, %v988_v41  ;;  %v2176_v5 = vld [vmem:[%s3447_s0 + $0x18] sm:$0xff]   ;;  %v2201_v41 = vld [vmem:[%s3447_s0 + $0xe0] sm:$0xff]  }
 0x28a   :  { %460 = vperm.xlu1 %2547, %v3138_v36   ;;  %2328 = vmatmul.mubr.msk.f32.gmra.mrb[4].mxu0 %vm1218_vm2, %v989_v42  ;;  %v2028_v33 = vunpack.c.l.bf16 %v2176_v5  ;;  %v2029_v44 = vunpack.c.h.bf16 %v2176_v5 }
 0x28c   :  { %v474_v47 = vmul.f32 %v2028_v33, %v421_v48  ;;  %v475_v59 = vmul.f32 %v2029_v44, %v426_v49  ;;  %v2033_v48 = vunpack.c.h.bf16 %v2177_v56  ;;  %v2128_v49 = vunpack.c.l.bf16 %v2201_v41 }
 0x28d   :  { %v2160_v33 = vunpack.c.l.bf16 %v2209_v26 }
 0x28e   :  { %v543_v19 = vpop.permute.xlu1 %542  ;;  %465 = vperm.xlu1 %2547, %v3157_v1  }
 0x28f   :  { %v587_v28 = vmul.f32 %v2060_v31, %v543_v19  ;;  %v2097_v19 = vunpack.c.h.bf16 %v2193_v38 }
 0x291   :  { %v603_v57 = vadd.f32 %v587_v28, %v474_v47 }
 0x292   :  { %v547_v50 = vpop.permute.xlu1 %546  ;;  %2549 = vset.pattern.permute.xlu1 %v2646_v4 }
 0x293   :  { %578 = vperm.xlu1 %2549, %v3157_v1   ;;  %v588_v12 = vmul.f32 %v2061_v17, %v547_v50  ;;  %v680_v50 = vpop.permute.xlu0 %679 }
 0x295   :  { %v604_v52 = vadd.f32 %v588_v12, %v475_v59 }
 0x297   :  { %v672_v4 = vpop.permute.xlu1 %671  ;;  %2551 = vset.pattern.permute.xlu1 %v2649_v37  ;;  %v733_v15 = vadd.f32 %v717_v35, %v604_v52  ;;  %v813_v47 = vpop.permute.xlu0 %812  ;;  %v2186_v52 = vld [vmem:[%s3447_s0 + $0x68] sm:$0xff]  }
 0x298   :  { %707 = vperm.xlu1 %2551, %v3157_v1   ;;  %v716_v7 = vmul.f32 %v2092_v51, %v672_v4  ;;  %v718_v51 = vmul.f32 %v2096_v39, %v680_v50  ;;  %v2129_v4 = vunpack.c.h.bf16 %v2201_v41 }
 0x29a   :  { %v732_v40 = vadd.f32 %v716_v7, %v603_v57  ;;  %v2161_v57 = vunpack.c.h.bf16 %v2209_v26  ;;  %v848_v43 = vmul.f32 %v2129_v4, %v813_v47  ;;  %v2179_v4 = vld [vmem:[%s3447_s0 + $0x30] sm:$0xff]  }
 0x29c   :  { %v801_v58 = vpop.permute.xlu1 %800  ;;  %2552 = vset.pattern.permute.xlu1 %v2648_v32  ;;  %v1484_v32 = vld [vmem:[%s3452_s5 + $0x8] sm:$0xff] }
 0x29d   :  { %v845_v37 = vmul.f32 %v2124_v9, %v801_v58  ;;  %832 = vperm.xlu1 %2552, %v3138_v36   ;;  %v2420_v45 = vpack.c.bf16 %v1484_v32, %v1483_v0  ;;  %v2068_v32 = vunpack.c.l.bf16 %v2186_v52 }
 0x29f   :  { %v861_v11 = vadd.f32 %v845_v37, %v732_v40  ;;  %2421 = vmatprep.subr.bf16.mxu1 %v2420_v45 }
 0x2a0   :  { %v805_v61 = vpop.permute.xlu1 %804  ;;  %2423 = vmatpush3.bf16.msra.mxu1 %v2420_v45  ;;  %v2069_v45 = vunpack.c.h.bf16 %v2186_v52 }
 0x2a1   :  { %v990_v60 = vadd.f32 %v974_v10, %v861_v11  ;;  %2554 = vset.pattern.permute.xlu1 %v2650_v27  ;;  %v846_v3 = vmul.f32 %v2125_v13, %v805_v61  ;;  %v1485_v27 = vld [vmem:[%s3452_s5 + $0x10] sm:$0xff]  ;;  %v441_v13 = vpop.permute.xlu0 %440  ;;  %v2178_v11 = vld [vmem:[%s3447_s0 + $0x28] sm:$0xff]  }
 0x2a2   :  { %961 = vperm.xlu1 %2554, %v3138_v36   ;;  %v2424_v36 = vpack.c.bf16 %v1486_v62, %v1485_v27  ;;  %v2194_v61 = vld [vmem:[%s3447_s0 + $0xa8] sm:$0xff]   ;;  %v2037_v35 = vunpack.c.h.bf16 %v2178_v11 }
 0x2a3   :  { %2330 = vmatprep.mubr.msk.f32.mxu0 %vm1218_vm2, %v990_v60  ;;  %v862_v18 = vadd.f32 %v846_v3, %v733_v15  ;;  %v2036_v3 = vunpack.c.l.bf16 %v2178_v11  ;;  %v2101_v15 = vunpack.c.h.bf16 %v2194_v61  ;;  %v2202_v27 = vld [vmem:[%s3447_s0 + $0xe8] sm:$0xff]  }
 0x2a4   :  { %2425 = vmatprep.subr.bf16.mxu1 %v2424_v36 }
 0x2a5   :  { %v934_v46 = vpop.permute.xlu1 %933  ;;  %2427 = vmatpush3.bf16.msra.mxu1 %v2424_v36  ;;  %v563_v0 = vpop.permute.xlu0 %562  ;;  %v478_v36 = vmul.f32 %v2036_v3, %v441_v13 }
 0x2a6   :  { %v975_v20 = vmul.f32 %v2157_v14, %v934_v46  ;;  %965 = vperm.xlu1 %2554, %v3157_v1   ;;  %v2064_v1 = vunpack.c.l.bf16 %v2185_v29  ;;  %v2100_v14 = vunpack.c.l.bf16 %v2194_v61  ;;  %v2210_v29 = vld [vmem:[%s3447_s0 + $0x128] sm:$0xff]  }
 0x2a8   :  { %v991_v23 = vadd.f32 %v975_v20, %v862_v18  ;;  %v589_v42 = vmul.f32 %v2064_v1, %v551_v55  ;;  %v2133_v20 = vunpack.c.h.bf16 %v2202_v27 }
 0x2aa   :  { %v431_v24 = vpop.permute.xlu1 %430  ;;  %2331 = vmatmul.mubr.msk.f32.gmra.mrb[6].mxu0 %vm1218_vm2, %v991_v23  ;;  %v817_v23 = vpop.permute.xlu0 %816 }
 0x2ab   :  { %v476_v2 = vmul.f32 %v2032_v30, %v431_v24 }
 0x2ad   :  { %v605_v31 = vadd.f32 %v589_v42, %v476_v2  ;;  %v2164_v2 = vunpack.c.l.bf16 %v2210_v29 }
 0x2ae   :  { %v436_v25 = vpop.permute.xlu1 %435  ;;  %v950_v42 = vpop.permute.xlu0 %949 }
 0x2af   :  { %v477_v53 = vmul.f32 %v2033_v48, %v436_v25  ;;  %v734_v17 = vadd.f32 %v718_v51, %v605_v31  ;;  %v592_v25 = vmul.f32 %v2069_v45, %v563_v0 }
 0x2b2   :  { %v456_v51 = vpop.permute.xlu0 %455 }
 0x2b3   :  { %v555_v63 = vpop.permute.xlu1 %554 }
 0x2b4   :  { %v590_v5 = vmul.f32 %v2065_v21, %v555_v63  ;;  %v2132_v63 = vunpack.c.l.bf16 %v2202_v27  ;;  %v2165_v21 = vunpack.c.h.bf16 %v2210_v29 }
 0x2b6   :  { %v606_v8 = vadd.f32 %v590_v5, %v477_v53  ;;  %v849_v41 = vmul.f32 %v2132_v63, %v817_v23  ;;  %v979_v50 = vmul.f32 %v2165_v21, %v950_v42  ;;  %v2187_v53 = vld [vmem:[%s3447_s0 + $0x70] sm:$0xff]   ;;  %v2180_v63 = vld [vmem:[%s3447_s0 + $0x38] sm:$0xff]  }
 0x2b7   :  { %v2045_v42 = vunpack.c.h.bf16 %v2180_v63 }
 0x2b8   :  { %v684_v6 = vpop.permute.xlu1 %683 }
 0x2b9   :  { %v719_v54 = vmul.f32 %v2097_v19, %v684_v6 }
 0x2bb   :  { %v735_v9 = vadd.f32 %v719_v54, %v606_v8  ;;  %v2195_v8 = vld [vmem:[%s3447_s0 + $0xb0] sm:$0xff]  }
 0x2bc   :  { %v2104_v47 = vunpack.c.l.bf16 %v2195_v8  ;;  %v2105_v0 = vunpack.c.h.bf16 %v2195_v8 }
 0x2bd   :  { %v809_v22 = vpop.permute.xlu1 %808  ;;  %v864_v40 = vadd.f32 %v848_v43, %v735_v9  ;;  %v2203_v9 = vld [vmem:[%s3447_s0 + $0xf0] sm:$0xff]   ;;  %v2073_v43 = vunpack.c.h.bf16 %v2187_v53 }
 0x2be   :  { %v847_v28 = vmul.f32 %v2128_v49, %v809_v22 }
 0x2c0   :  { %v863_v44 = vadd.f32 %v847_v28, %v734_v17  ;;  %v2072_v28 = vunpack.c.l.bf16 %v2187_v53  ;;  %v2040_v17 = vunpack.c.l.bf16 %v2179_v4 }
 0x2c2   :  { %v938_v7 = vpop.permute.xlu1 %937 }
 0x2c3   :  { %v976_v34 = vmul.f32 %v2160_v33, %v938_v7  ;;  %v700_v7 = vpop.permute.xlu0 %699 }
 0x2c5   :  { %v992_v12 = vadd.f32 %v976_v34, %v863_v44 }
 0x2c6   :  { %v942_v58 = vpop.permute.xlu1 %941 }
 0x2c7   :  { %v977_v37 = vmul.f32 %v2161_v57, %v942_v58  ;;  %2333 = vmatprep.mubr.msk.f32.mxu0 %vm1218_vm2, %v992_v12  ;;  %v2211_v57 = vld [vmem:[%s3447_s0 + $0x130] sm:$0xff]   ;;  %v954_v13 = vpop.permute.xlu0 %953 }
 0x2c9   :  { %v993_v59 = vadd.f32 %v977_v37, %v864_v40  ;;  %v2136_v40 = vunpack.c.l.bf16 %v2203_v9  ;;  %v2041_v37 = vunpack.c.h.bf16 %v2179_v4 }
 0x2cb   :  { %v559_v16 = vpop.permute.xlu1 %558  ;;  %2334 = vmatmul.mubr.msk.f32.gmra.mrb[8].mxu0 %vm1218_vm2, %v993_v59  ;;  %v2168_v59 = vunpack.c.l.bf16 %v2211_v57 }
 0x2cc   :  { %v591_v62 = vmul.f32 %v2068_v32, %v559_v16  ;;  %v2137_v32 = vunpack.c.h.bf16 %v2203_v9  ;;  %v3344_v9 = vld [vmem:[%s3451_s4] ss:$0 sm:$0xff] }
 0x2ce   :  { %v607_v30 = vadd.f32 %v591_v62, %v478_v36  ;;  %v2169_v62 = vunpack.c.h.bf16 %v2211_v57 }
 0x2d0   :  { %v446_v10 = vpop.permute.xlu1 %445 }
 0x2d1   :  { %v479_v18 = vmul.f32 %v2037_v35, %v446_v10  ;;  %v980_v35 = vmul.f32 %v2168_v59, %v954_v13 }
 0x2d3   :  { %v608_v1 = vadd.f32 %v592_v25, %v479_v18 }
 0x2d5   :  { %v688_v60 = vpop.permute.xlu1 %687 }
 0x2d6   :  { %v720_v24 = vmul.f32 %v2100_v14, %v688_v60  ;;  %v481_v60 = vmul.f32 %v2041_v37, %v456_v51 }
 0x2d8   :  { %v736_v6 = vadd.f32 %v720_v24, %v607_v30  ;;  %v2188_v30 = vld [vmem:[%s3447_s0 + $0x78] sm:$0xff]  }
 0x2d9   :  { %v692_v46 = vpop.permute.xlu1 %691 }
 0x2da   :  { %v721_v56 = vmul.f32 %v2101_v15, %v692_v46  ;;  %v865_v49 = vadd.f32 %v849_v41, %v736_v6  ;;  %v723_v46 = vmul.f32 %v2105_v0, %v700_v7  ;;  %v2196_v6 = vld [vmem:[%s3447_s0 + $0xb8] sm:$0xff]  }
 0x2db   :  { %v2204_v41 = vld [vmem:[%s3447_s0 + $0xf8] sm:$0xff]  }
 0x2dc   :  { %v737_v39 = vadd.f32 %v721_v56, %v608_v1  ;;  %v2044_v1 = vunpack.c.l.bf16 %v2180_v63  ;;  %v2141_v8 = vunpack.c.h.bf16 %v2204_v41 }
 0x2de   :  { %v821_v55 = vpop.permute.xlu1 %820 }
 0x2df   :  { %v850_v38 = vmul.f32 %v2133_v20, %v821_v55  ;;  %v575_v55 = vpop.permute.xlu0 %574 }
 0x2e1   :  { %v866_v48 = vadd.f32 %v850_v38, %v737_v39  ;;  %v2076_v38 = vunpack.c.l.bf16 %v2188_v30 }
 0x2e3   :  { %v946_v19 = vpop.permute.xlu1 %945  ;;  %v995_v5 = vadd.f32 %v979_v50, %v866_v48  ;;  %v2109_v48 = vunpack.c.h.bf16 %v2196_v6  ;;  %v2140_v50 = vunpack.c.l.bf16 %v2204_v41  ;;  %v2651_v41 = vmov 0.0|0.0  }
 0x2e4   :  { %v978_v26 = vmul.f32 %v2164_v2, %v946_v19  ;;  %v2077_v2 = vunpack.c.h.bf16 %v2188_v30  ;;  %v595_v19 = vmul.f32 %v2076_v38, %v575_v55  ;;  %2428 = vmatprep.subr.bf16.mxu1 %v2651_v41 }
 0x2e6   :  { %v994_v31 = vadd.f32 %v978_v26, %v865_v49  ;;  %v2108_v49 = vunpack.c.l.bf16 %v2196_v6  ;;  %v704_v26 = vpop.permute.xlu0 %703 }
 0x2e8   :  { %v451_v22 = vpop.permute.xlu1 %450  ;;  %2336 = vmatprep.mubr.msk.f32.mxu0 %vm1218_vm2, %v994_v31 }
 0x2e9   :  { %2337 = vmatmul.mubr.msk.f32.gmra.mrb[10].mxu0 %vm1218_vm2, %v995_v5  ;;  %v480_v12 = vmul.f32 %v2040_v17, %v451_v22  ;;  %v2212_v5 = vld [vmem:[%s3447_s0 + $0x138] sm:$0xff]  }
 0x2ea   :  { %v2172_v4 = vunpack.c.l.bf16 %v2212_v5 }
 0x2ed   :  { %v567_v33 = vpop.permute.xlu1 %566 }
 0x2ee   :  { %v593_v44 = vmul.f32 %v2072_v28, %v567_v33 }
 0x2f0   :  { %v609_v16 = vadd.f32 %v593_v44, %v480_v12 }
 0x2f1   :  { %v571_v54 = vpop.permute.xlu1 %570 }
 0x2f2   :  { %v594_v10 = vmul.f32 %v2073_v43, %v571_v54  ;;  %v724_v54 = vmul.f32 %v2108_v49, %v704_v26 }
 0x2f4   :  { %v610_v14 = vadd.f32 %v594_v10, %v481_v60 }
 0x2f6   :  { %v696_v34 = vpop.permute.xlu1 %695  ;;  %v739_v18 = vadd.f32 %v723_v46, %v610_v14 }
 0x2f7   :  { %v722_v58 = vmul.f32 %v2104_v47, %v696_v34  ;;  %v837_v47 = vpop.permute.xlu0 %836 }
 0x2f9   :  { %v738_v52 = vadd.f32 %v722_v58, %v609_v16  ;;  %v2173_v58 = vunpack.c.h.bf16 %v2212_v5 }
 0x2fb   :  { %v825_v11 = vpop.permute.xlu1 %824 }
 0x2fc   :  { %v851_v61 = vmul.f32 %v2136_v40, %v825_v11  ;;  %v854_v40 = vmul.f32 %v2141_v8, %v837_v47 }
 0x2fe   :  { %v867_v3 = vadd.f32 %v851_v61, %v738_v52 }
 0x2ff   :  { %v829_v45 = vpop.permute.xlu1 %828 }
 0x300   :  { %v996_v15 = vadd.f32 %v980_v35, %v867_v3  ;;  %v852_v27 = vmul.f32 %v2137_v32, %v829_v45 }
 0x302   :  { %2339 = vmatprep.mubr.msk.f32.mxu0 %vm1218_vm2, %v996_v15  ;;  %v868_v36 = vadd.f32 %v852_v27, %v739_v18 }
 0x304   :  { %v958_v20 = vpop.permute.xlu1 %957 }
 0x305   :  { %v981_v23 = vmul.f32 %v2169_v62, %v958_v20 }
 0x307   :  { %v997_v24 = vadd.f32 %v981_v23, %v868_v36 }
 0x309   :  { %v461_v25 = vpop.permute.xlu1 %460  ;;  %2340 = vmatmul.mubr.msk.f32.gmra.mrb[12].mxu0 %vm1218_vm2, %v997_v24 }
 0x30a   :  { %v482_v39 = vmul.f32 %v2044_v1, %v461_v25 }
 0x30c   :  { %v611_v22 = vadd.f32 %v595_v19, %v482_v39 }
 0x30d   :  { %v466_v56 = vpop.permute.xlu1 %465 }
 0x30e   :  { %v483_v51 = vmul.f32 %v2045_v42, %v466_v56  ;;  %v740_v7 = vadd.f32 %v724_v54, %v611_v22 }
 0x312   :  { %v579_v29 = vpop.permute.xlu1 %578 }
 0x313   :  { %v596_v31 = vmul.f32 %v2077_v2, %v579_v29 }
 0x315   :  { %v612_v17 = vadd.f32 %v596_v31, %v483_v51 }
 0x317   :  { %v708_v21 = vpop.permute.xlu1 %707 }
 0x318   :  { %v725_v53 = vmul.f32 %v2109_v48, %v708_v21 }
 0x31a   :  { %v741_v44 = vadd.f32 %v725_v53, %v612_v17 }
 0x31c   :  { %v833_v33 = vpop.permute.xlu1 %832  ;;  %v870_v52 = vadd.f32 %v854_v40, %v741_v44 }
 0x31d   :  { %v853_v28 = vmul.f32 %v2140_v50, %v833_v33 }
 0x31f   :  { %v869_v57 = vadd.f32 %v853_v28, %v740_v7 }
 0x321   :  { %v962_v34 = vpop.permute.xlu1 %961 }
 0x322   :  { %v982_v43 = vmul.f32 %v2172_v4, %v962_v34  ;;  %v2323_v12 = vpop.f32.mrb[0].mxu0 }
 0x323   :  { %v1420_v37 = vadd.f32 %v2323_v12, %v3344_v9  ;;  %v1333_v59 = vpop.f32.mrb[1].mxu0 }
 0x324   :  { %v998_v16 = vadd.f32 %v982_v43, %v869_v57  ;;  %v1419_v13 = vadd.f32 %v3344_v9, %v1333_v59 }
 0x325   :  { %v1452_v10 = vmul.f32 0.2, %v1420_v37  ;;  %v966_v11 = vpop.permute.xlu1 %965  ;;  %vm1436_vm3 = vcmp.gt.f32.partialorder %v1420_v37, 0.0 }
 0x326   :  { %v983_v61 = vmul.f32 %v2173_v58, %v966_v11  ;;  %2342 = vmatprep.mubr.msk.f32.mxu0 %vm1218_vm2, %v998_v16  ;;  %vm1435_vm4 = vcmp.gt.f32.partialorder %v1419_v13, 0.0  ;;  %v1451_v60 = vmul.f32 0.2, %v1419_v13  ;;  %v3380_v58 = vld [vmem:[%s3453_s6] ss:$0 sm:$0xff] }
 0x327   :  { %v1468_v35 = vsel %vm1436_vm3, %v1420_v37, %v1452_v10 }
 0x328   :  { %v999_v0 = vadd.f32 %v983_v61, %v870_v52  ;;  %v1467_v32 = vsel %vm1435_vm4, %v1419_v13, %v1451_v60 }
 0x329   :  { %2353 = vmatprep.mubr.msk.f32.mxu1 %vm1218_vm2, %v1467_v32 }
 0x32a   :  { %2343 = vmatmul.mubr.msk.f32.gmra.mrb[14].mxu0 %vm1218_vm2, %v999_v0  ;;  %2354 = vmatmul.mubr.msk.f32.vlgmr.msra.gmra.mrb[0].mxu1 %vm1218_vm2, %v1468_v35 }
 0x33f   :  { %v2326_v3 = vpop.f32.mrb[2].mxu0 }
 0x340   :  { %v1422_v14 = vadd.f32 %v2326_v3, %v3344_v9  ;;  %v1343_v45 = vpop.f32.mrb[3].mxu0 }
 0x341   :  { %v1421_v15 = vadd.f32 %v3344_v9, %v1343_v45 }
 0x342   :  { %v1454_v46 = vmul.f32 0.2, %v1422_v14  ;;  %vm1438_vm5 = vcmp.gt.f32.partialorder %v1422_v14, 0.0 }
 0x343   :  { %vm1437_vm6 = vcmp.gt.f32.partialorder %v1421_v15, 0.0  ;;  %v1453_v27 = vmul.f32 0.2, %v1421_v15 }
 0x344   :  { %v1470_v18 = vsel %vm1438_vm5, %v1422_v14, %v1454_v46 }
 0x345   :  { %v1469_v62 = vsel %vm1437_vm6, %v1421_v15, %v1453_v27  ;;  %vm3388_vm6 = vmpackc.low %vm1218_vm2, %vm1218_vm2 }
 0x346   :  { %2356 = vmatprep.mubr.msk.f32.mxu1 %vm1218_vm2, %v1469_v62 }
 0x347   :  { %2357 = vmatmul.mubr.msk.f32.gmra.mrb[2].mxu1 %vm1218_vm2, %v1470_v18 }
 0x35d   :  { %v2329_v20 = vpop.f32.mrb[4].mxu0 }
 0x35e   :  { %v1424_v36 = vadd.f32 %v2329_v20, %v3344_v9  ;;  %v1353_v23 = vpop.f32.mrb[5].mxu0 }
 0x35f   :  { %v1423_v24 = vadd.f32 %v3344_v9, %v1353_v23 }
 0x360   :  { %v1456_v25 = vmul.f32 0.2, %v1424_v36  ;;  %vm1440_vm7 = vcmp.gt.f32.partialorder %v1424_v36, 0.0 }
 0x361   :  { %vm1439_vm8 = vcmp.gt.f32.partialorder %v1423_v24, 0.0  ;;  %v1455_v56 = vmul.f32 0.2, %v1423_v24 }
 0x362   :  { %v1472_v29 = vsel %vm1440_vm7, %v1424_v36, %v1456_v25 }
 0x363   :  { %v1471_v63 = vsel %vm1439_vm8, %v1423_v24, %v1455_v56 }
 0x364   :  { %2359 = vmatprep.mubr.msk.f32.mxu1 %vm1218_vm2, %v1471_v63 }
 0x365   :  { %2360 = vmatmul.mubr.msk.f32.gmra.mrb[4].mxu1 %vm1218_vm2, %v1472_v29 }
 0x37d   :  { %v2332_v30 = vpop.f32.mrb[6].mxu0 }
 0x37e   :  { %v1426_v55 = vadd.f32 %v2332_v30, %v3344_v9  ;;  %v1363_v1 = vpop.f32.mrb[7].mxu0 }
 0x37f   :  { %v1425_v38 = vadd.f32 %v3344_v9, %v1363_v1 }
 0x380   :  { %v1458_v6 = vmul.f32 0.2, %v1426_v55  ;;  %vm1442_vm9 = vcmp.gt.f32.partialorder %v1426_v55, 0.0 }
 0x381   :  { %vm1441_vm10 = vcmp.gt.f32.partialorder %v1425_v38, 0.0  ;;  %v1457_v2 = vmul.f32 0.2, %v1425_v38 }
 0x382   :  { %v1474_v39 = vsel %vm1442_vm9, %v1426_v55, %v1458_v6 }
 0x383   :  { %v1473_v21 = vsel %vm1441_vm10, %v1425_v38, %v1457_v2 }
 0x384   :  { %2362 = vmatprep.mubr.msk.f32.mxu1 %vm1218_vm2, %v1473_v21 }
 0x385   :  { %2363 = vmatmul.mubr.msk.f32.gmra.mrb[6].mxu1 %vm1218_vm2, %v1474_v39 }
 0x39e   :  { %v2335_v42 = vpop.f32.mrb[8].mxu0 }
 0x39f   :  { %v1428_v48 = vadd.f32 %v2335_v42, %v3344_v9  ;;  %v1373_v19 = vpop.f32.mrb[9].mxu0 }
 0x3a0   :  { %v1427_v49 = vadd.f32 %v3344_v9, %v1373_v19 }
 0x3a1   :  { %v1460_v26 = vmul.f32 0.2, %v1428_v48  ;;  %vm1444_vm11 = vcmp.gt.f32.partialorder %v1428_v48, 0.0 }
 0x3a2   :  { %vm1443_vm12 = vcmp.gt.f32.partialorder %v1427_v49, 0.0  ;;  %v1459_v50 = vmul.f32 0.2, %v1427_v49 }
 0x3a3   :  { %v1476_v5 = vsel %vm1444_vm11, %v1428_v48, %v1460_v26 }
 0x3a4   :  { %v1475_v31 = vsel %vm1443_vm12, %v1427_v49, %v1459_v50 }
 0x3a5   :  { %2365 = vmatprep.mubr.msk.f32.mxu1 %vm1218_vm2, %v1475_v31 }
 0x3a6   :  { %2366 = vmatmul.mubr.msk.f32.gmra.mrb[8].mxu1 %vm1218_vm2, %v1476_v5  ;;  %v2653_v5 = vmov 0.0  }
 0x3bc   :  { %v2338_v22 = vpop.f32.mrb[10].mxu0 }
 0x3bd   :  { %v1430_v33 = vadd.f32 %v2338_v22, %v3344_v9  ;;  %v1383_v51 = vpop.f32.mrb[11].mxu0  ;;  %v1736_v22 = vld [vmem:[#allocation2] sm:$0x1] }
 0x3be   :  { %v1429_v53 = vadd.f32 %v3344_v9, %v1383_v51  ;;  %1739 = vperm.xlu0 %2555, %v1736_v22  }
 0x3bf   :  { %v1462_v54 = vmul.f32 0.2, %v1430_v33  ;;  %vm1446_vm13 = vcmp.gt.f32.partialorder %v1430_v33, 0.0 }
 0x3c0   :  { %vm1445_vm14 = vcmp.gt.f32.partialorder %v1429_v53, 0.0  ;;  %v1461_v28 = vmul.f32 0.2, %v1429_v53 }
 0x3c1   :  { %v1478_v8 = vsel %vm1446_vm13, %v1430_v33, %v1462_v54  ;;  %vm2652_vm13 = vmmov 0  }
 0x3c2   :  { %v1477_v4 = vsel %vm1445_vm14, %v1429_v53, %v1461_v28 }
 0x3c3   :  { %2368 = vmatprep.mubr.msk.f32.mxu1 %vm1218_vm2, %v1477_v4 }
 0x3c4   :  { %2369 = vmatmul.mubr.msk.f32.gmra.mrb[10].mxu1 %vm1218_vm2, %v1478_v8 }
 0x3dc   :  { %v2341_v17 = vpop.f32.mrb[12].mxu0 }
 0x3dd   :  { %v1432_v47 = vadd.f32 %v2341_v17, %v3344_v9  ;;  %v1393_v7 = vpop.f32.mrb[13].mxu0 }
 0x3de   :  { %v1431_v44 = vadd.f32 %v3344_v9, %v1393_v7 }
 0x3df   :  { %v1464_v34 = vmul.f32 0.2, %v1432_v47  ;;  %vm1448_vm15 = vcmp.gt.f32.partialorder %v1432_v47, 0.0 }
 0x3e0   :  { %vm1447_vm0 = vcmp.gt.f32.partialorder %v1431_v44, 0.0  ;;  %v1463_v57 = vmul.f32 0.2, %v1431_v44 }
 0x3e1   :  { %v1480_v12 = vsel %vm1448_vm15, %v1432_v47, %v1464_v34 }
 0x3e2   :  { %v1479_v43 = vsel %vm1447_vm0, %v1431_v44, %v1463_v57 }
 0x3e3   :  { %2371 = vmatprep.mubr.msk.f32.mxu1 %vm1218_vm2, %v1479_v43 }
 0x3e4   :  { %2372 = vmatmul.mubr.msk.f32.gmra.mrb[12].mxu1 %vm1218_vm2, %v1480_v12 }
 0x3fd   :  { %v2344_v40 = vpop.f32.mrb[14].mxu0  ;;  %v2355_v37 = vpop.f32.mrb[0].mxu1 }
 0x3fe   :  { %v1434_v59 = vadd.f32 %v2344_v40, %v3344_v9  ;;  %v1614_v16 = vadd.f32 %v2355_v37, %v3380_v58  ;;  %v1403_v13 = vpop.f32.mrb[15].mxu0  ;;  %v1608_v10 = vpop.f32.mrb[1].mxu1 }
 0x3ff   :  { %v1433_v11 = vadd.f32 %v3344_v9, %v1403_v13  ;;  %v1609_v52 = vadd.f32 %v3380_v58, %v1608_v10 }
 0x400   :  { %vm1450_vm1 = vcmp.gt.f32.partialorder %v1434_v59, 0.0  ;;  %v1466_v61 = vmul.f32 0.2, %v1434_v59  ;;  %vm1688_vm3 = vcmp.gt.f32.partialorder %v1614_v16, 0.0  ;;  %v1704_v60 = vmul.f32 0.2, %v1614_v16 }
 0x401   :  { %vm1449_vm4 = vcmp.gt.f32.partialorder %v1433_v11, 0.0  ;;  %v1465_v0 = vmul.f32 0.2, %v1433_v11  ;;  %vm1687_vm5 = vcmp.gt.f32.partialorder %v1609_v52, 0.0  ;;  %v1703_v32 = vmul.f32 0.2, %v1609_v52 }
 0x402   :  { %v1720_v35 = vsel %vm1688_vm3, %v1614_v16, %v1704_v60  ;;  %v1482_v15 = vsel %vm1450_vm1, %v1434_v59, %v1466_v61 }
 0x403   :  { %v1719_v3 = vsel %vm1687_vm5, %v1609_v52, %v1703_v32  ;;  %v1481_v14 = vsel %vm1449_vm4, %v1433_v11, %v1465_v0 }
 0x404   :  { %v2429_v9 = vpack.c.bf16 %v1720_v35, %v1719_v3  ;;  %2374 = vmatprep.mubr.msk.f32.mxu1 %vm1218_vm2, %v1481_v14 }
 0x405   :  { %2375 = vmatmul.mubr.msk.f32.gmra.mrb[14].mxu1 %vm1218_vm2, %v1482_v15 }
 0x406   :  { %2431 = vmatpush3.bf16.xpose.msk.msra.mxu1 %vm3388_vm6, %v2429_v9  ;;  %2409 = vmatprep.mubr.msk.f32.mxu1 %vm2652_vm13, %v2653_v5 }
 0x407   :  { %2432 = vmatprep.subr.bf16.mxu1 %v2651_v41 }
 0x41a   :  { %v2358_v46 = vpop.f32.mrb[2].mxu1 }
 0x41b   :  { %v1624_v27 = vadd.f32 %v2358_v46, %v3380_v58  ;;  %v1618_v62 = vpop.f32.mrb[3].mxu1 }
 0x41c   :  { %v1619_v18 = vadd.f32 %v3380_v58, %v1618_v62 }
 0x41d   :  { %vm1690_vm7 = vcmp.gt.f32.partialorder %v1624_v27, 0.0  ;;  %v1706_v20 = vmul.f32 0.2, %v1624_v27 }
 0x41e   :  { %vm1689_vm8 = vcmp.gt.f32.partialorder %v1619_v18, 0.0  ;;  %v1705_v36 = vmul.f32 0.2, %v1619_v18 }
 0x41f   :  { %v1722_v23 = vsel %vm1690_vm7, %v1624_v27, %v1706_v20  ;;  %v1742_v20 = vlaneseq }
 0x420   :  { %v1721_v24 = vsel %vm1689_vm8, %v1619_v18, %v1705_v36 }
 0x421   :  { %v2433_v25 = vpack.c.bf16 %v1722_v23, %v1721_v24  ;;  %v1743_v36 = vshrl.u32 %v1742_v20, 7 }
 0x423   :  { %2435 = vmatpush3.bf16.xpose.msk.msra.mxu1 %vm3388_vm6, %v2433_v25  ;;  %v1744_v23 = vsub.s32 0, %v1743_v36 }
 0x424   :  { %2436 = vmatprep.subr.bf16.mxu1 %v2651_v41 }
 0x438   :  { %v2361_v56 = vpop.f32.mrb[4].mxu1 }
 0x439   :  { %v1634_v63 = vadd.f32 %v2361_v56, %v3380_v58  ;;  %v1628_v29 = vpop.f32.mrb[5].mxu1 }
 0x43a   :  { %v1629_v30 = vadd.f32 %v3380_v58, %v1628_v29 }
 0x43b   :  { %vm1692_vm9 = vcmp.gt.f32.partialorder %v1634_v63, 0.0  ;;  %v1708_v55 = vmul.f32 0.2, %v1634_v63 }
 0x43c   :  { %vm1691_vm10 = vcmp.gt.f32.partialorder %v1629_v30, 0.0  ;;  %v1707_v1 = vmul.f32 0.2, %v1629_v30 }
 0x43d   :  { %v1724_v38 = vsel %vm1692_vm9, %v1634_v63, %v1708_v55 }
 0x43e   :  { %v1723_v6 = vsel %vm1691_vm10, %v1629_v30, %v1707_v1 }
 0x43f   :  { %v2437_v2 = vpack.c.bf16 %v1724_v38, %v1723_v6 }
 0x441   :  { %2439 = vmatpush3.bf16.xpose.msk.msra.mxu1 %vm3388_vm6, %v2437_v2 }
 0x442   :  { %2440 = vmatprep.subr.bf16.mxu1 %v2651_v41 }
 0x458   :  { %v2364_v21 = vpop.f32.mrb[6].mxu1 }
 0x459   :  { %v1644_v39 = vadd.f32 %v2364_v21, %v3380_v58  ;;  %v1638_v42 = vpop.f32.mrb[7].mxu1 }
 0x45a   :  { %v1639_v48 = vadd.f32 %v3380_v58, %v1638_v42 }
 0x45b   :  { %vm1694_vm11 = vcmp.gt.f32.partialorder %v1644_v39, 0.0  ;;  %v1710_v19 = vmul.f32 0.2, %v1644_v39 }
 0x45c   :  { %vm1693_vm12 = vcmp.gt.f32.partialorder %v1639_v48, 0.0  ;;  %v1709_v49 = vmul.f32 0.2, %v1639_v48 }
 0x45d   :  { %v1726_v26 = vsel %vm1694_vm11, %v1644_v39, %v1710_v19 }
 0x45e   :  { %v1725_v50 = vsel %vm1693_vm12, %v1639_v48, %v1709_v49 }
 0x45f   :  { %v2441_v31 = vpack.c.bf16 %v1726_v26, %v1725_v50 }
 0x461   :  { %2443 = vmatpush3.bf16.xpose.msk.msra.mxu1 %vm3388_vm6, %v2441_v31 }
 0x462   :  { %2444 = vmatprep.subr.bf16.mxu1 %v2651_v41 }
 0x479   :  { %v2367_v33 = vpop.f32.mrb[8].mxu1 }
 0x47a   :  { %v1654_v51 = vadd.f32 %v2367_v33, %v3380_v58  ;;  %v1648_v53 = vpop.f32.mrb[9].mxu1 }
 0x47b   :  { %v1649_v54 = vadd.f32 %v3380_v58, %v1648_v53 }
 0x47c   :  { %vm1696_vm14 = vcmp.gt.f32.partialorder %v1654_v51, 0.0  ;;  %v1712_v28 = vmul.f32 0.2, %v1654_v51 }
 0x47d   :  { %vm1695_vm15 = vcmp.gt.f32.partialorder %v1649_v54, 0.0  ;;  %v1711_v4 = vmul.f32 0.2, %v1649_v54 }
 0x47e   :  { %v1728_v8 = vsel %vm1696_vm14, %v1654_v51, %v1712_v28 }
 0x47f   :  { %v1727_v17 = vsel %vm1695_vm15, %v1649_v54, %v1711_v4 }
 0x480   :  { %v2445_v47 = vpack.c.bf16 %v1728_v8, %v1727_v17 }
 0x482   :  { %2447 = vmatpush3.bf16.xpose.msk.msra.mxu1 %vm3388_vm6, %v2445_v47 }
 0x483   :  { %2448 = vmatprep.subr.bf16.mxu1 %v2651_v41 }
 0x497   :  { %v2370_v7 = vpop.f32.mrb[10].mxu1 }
 0x498   :  { %v1664_v44 = vadd.f32 %v2370_v7, %v3380_v58  ;;  %v1658_v34 = vpop.f32.mrb[11].mxu1 }
 0x499   :  { %v1659_v57 = vadd.f32 %v3380_v58, %v1658_v34 }
 0x49a   :  { %vm1698_vm0 = vcmp.gt.f32.partialorder %v1664_v44, 0.0  ;;  %v1714_v43 = vmul.f32 0.2, %v1664_v44 }
 0x49b   :  { %vm1697_vm1 = vcmp.gt.f32.partialorder %v1659_v57, 0.0  ;;  %v1713_v12 = vmul.f32 0.2, %v1659_v57 }
 0x49c   :  { %v1730_v40 = vsel %vm1698_vm0, %v1664_v44, %v1714_v43 }
 0x49d   :  { %v1729_v37 = vsel %vm1697_vm1, %v1659_v57, %v1713_v12 }
 0x49e   :  { %v2449_v59 = vpack.c.bf16 %v1730_v40, %v1729_v37 }
 0x4a0   :  { %2451 = vmatpush3.bf16.xpose.msk.msra.mxu1 %vm3388_vm6, %v2449_v59 }
 0x4a1   :  { %2452 = vmatprep.subr.bf16.mxu1 %v2651_v41 }
 0x4b7   :  { %v2373_v16 = vpop.f32.mrb[12].mxu1 }
 0x4b8   :  { %v1674_v13 = vadd.f32 %v2373_v16, %v3380_v58  ;;  %v1668_v10 = vpop.f32.mrb[13].mxu1 }
 0x4b9   :  { %v1669_v11 = vadd.f32 %v3380_v58, %v1668_v10 }
 0x4ba   :  { %vm1700_vm3 = vcmp.gt.f32.partialorder %v1674_v13, 0.0  ;;  %v1716_v52 = vmul.f32 0.2, %v1674_v13 }
 0x4bb   :  { %vm1699_vm4 = vcmp.gt.f32.partialorder %v1669_v11, 0.0  ;;  %v1715_v61 = vmul.f32 0.2, %v1669_v11 }
 0x4bc   :  { %v1732_v60 = vsel %vm1700_vm3, %v1674_v13, %v1716_v52 }
 0x4bd   :  { %v1731_v0 = vsel %vm1699_vm4, %v1669_v11, %v1715_v61 }
 0x4be   :  { %v2453_v32 = vpack.c.bf16 %v1732_v60, %v1731_v0 }
 0x4c0   :  { %2455 = vmatpush3.bf16.xpose.msk.msra.mxu1 %vm3388_vm6, %v2453_v32 }
 0x4c1   :  { %2456 = vmatprep.subr.bf16.mxu1 %v2651_v41  ;;  %v1735_v41 = vld [vmem:[%s3454_s7] sm:$0x1] }
 0x4d8   :  { %v2376_v35 = vpop.f32.mrb[14].mxu1 }
 0x4d9   :  { %v1684_v3 = vadd.f32 %v2376_v35, %v3380_v58  ;;  %v1678_v14 = vpop.f32.mrb[15].mxu1 }
 0x4da   :  { %v1679_v9 = vadd.f32 %v3380_v58, %v1678_v14  ;;  %v1740_v58 = vpop.permute.xlu0 %1739 }
 0x4db   :  { %vm1702_vm5 = vcmp.gt.f32.partialorder %v1684_v3, 0.0  ;;  %v1718_v15 = vmul.f32 0.2, %v1684_v3  ;;  %v1745_v24 = vrot.slane %v1740_v58, %v1744_v23 }
 0x4dc   :  { %vm1701_vm7 = vcmp.gt.f32.partialorder %v1679_v9, 0.0  ;;  %v1717_v46 = vmul.f32 0.2, %v1679_v9 }
 0x4dd   :  { %v1734_v27 = vsel %vm1702_vm5, %v1684_v3, %v1718_v15 }
 0x4de   :  { %v1733_v62 = vsel %vm1701_vm7, %v1679_v9, %v1717_v46 }
 0x4df   :  { %v2457_v18 = vpack.c.bf16 %v1734_v27, %v1733_v62 }
 0x4e1   :  { %2459 = vmatpush3.bf16.xpose.msk.msra.mxu1 %vm3388_vm6, %v2457_v18 }
 0x4e8   :  { %2410 = vmatmul.mubr.msk.f32.vlgmr.msra.gmra.mrb[16].mxu1 %vm1218_vm2, %v1735_v41 }
 0x5bb   :  { %v1863_v25 = vpop.f32.mrb[16].mxu1 }
 0x5bc   :  { %v1864_v56 = vadd.f32 %v1863_v25, %v1745_v24  ;;  %v2411_v63 = vpop.f32.mrb[17].mxu1 }
 0x5be   :  { %1867 = vst [vmem:[#allocation3] sm:$0x1] %v1864_v56 }
 0x5bf   :  { %2631 = shalt.err (!%p2628_p4)
}
 0x5c0   :  { %s2632_s24 = scalar_lea.hbm %s3456_s9, 16 }
 0x5c1   :  { %p2633_p5 = scmp.ne.s32.totalorder %s3456_s9, %s2632_s24  ;;  %p2636_p6 = scmp.lt.u32.totalorder %s2632_s24, %s3456_s9 }
 0x5c3   :  { %p2638_p7 = pnand %p2636_p6, %p2633_p5 }
 0x5c5   :  { %2641 = shalt.err (!%p2638_p7)
}
 0x5c6   :  { %1877 = dma.vmem_to_hbm [thread:$0]  %s1875_s23, 16, %s3456_s9, [#allocation4]  }
 0x5c7   :  { %2642 = dma.done.wait [#allocation4], 16  }
 0x5c8   :  { %2643 = vsyncadd [#allocation4], 4294967280 }
 0x5c9   :  { %1881 = vsyncpa [#allocation4], 1 }

</bundles_post_ra>
